<compile_context>
chip_gen: v6e
topology: v6e:2x2x1
jax: 0.10.0
libtpu: 0.0.40
codegen_flags: <defaults>
</compile_context>

<pallas_src>
import functools

import jax
import jax.numpy as jnp
from jax.experimental import pallas as pl
from jax.experimental.pallas import tpu as pltpu


def _layernorm(x, gamma, beta, eps=1e-5):
    mu = jnp.mean(x, axis=-1, keepdims=True)
    var = jnp.mean((x - mu) ** 2, axis=-1, keepdims=True)
    return (x - mu) * jax.lax.rsqrt(var + eps) * gamma + beta


def _gelu(x, approximate):
    if approximate:
        # tanh form: routes through the EUP instead of a long VPU erf polynomial.
        return jax.nn.gelu(x, approximate=True)
    # PyTorch nn.GELU default = exact erf formulation.
    return 0.5 * x * (1.0 + jax.lax.erf(x * jnp.float32(0.7071067811865476)))


def encoder_block_kernel(x_ref, g1_ref, b1_ref, wqkv_ref, bqkv_ref,
                         wo_ref, bo_ref, g2_ref, b2_ref,
                         w1_ref, fb1_ref, w2_ref, fb2_ref,
                         o_ref, q_cache, k_cache, v_cache,
                         *, num_heads, seq_tile, kv_tile, approx_gelu):
    f32 = jnp.float32
    cdt = wqkv_ref.dtype                      # matmul compute dtype (f32/bf16)
    L, C = x_ref.shape                        # full sequence per batch element
    H = num_heads
    dh = C // H
    inv_temp = f32(1.0 / (dh ** 0.5))         # qk scale = 1/sqrt(head_dim)

    # ---------------- once per batch element: LN1 + fused QKV ----------------
    # Cached in VMEM scratch and reused by every query tile of this batch
    # element (seq-tile grid axis is "arbitrary", so iteration is in order).
    @pl.when(pl.program_id(1) == 0)
    def _build_qkv_cache():
        x_full = x_ref[...].astype(f32)                       # (L, C)
        x2 = _layernorm(x_full, g1_ref[...], b1_ref[...])     # LN1 once
        qkv = (jnp.dot(x2.astype(cdt), wqkv_ref[...],         # (L, 3C), one MXU stream
                       preferred_element_type=f32) + bqkv_ref[...])
        q = qkv[:, 0 * C:1 * C] * inv_temp                    # scale fused once
        k = qkv[:, 1 * C:2 * C]
        v = qkv[:, 2 * C:3 * C]
        # Head split done ONCE per batch element, straight into (H, L, dh)
        # scratch so the per-tile attention matmuls need no relayout.
        for h in range(H):
            sl = slice(h * dh, (h + 1) * dh)
            q_cache[h, :, :] = q[:, sl].astype(cdt)
            k_cache[h, :, :] = k[:, sl].astype(cdt)
            v_cache[h, :, :] = v[:, sl].astype(cdt)

    # ---------------- per query-tile work ----------------
    if seq_tile == L:
        x_q = x_ref[...].astype(f32)                          # residual input
        q_t = q_cache[...]                                    # (H, L, dh)
    else:
        start = pl.multiple_of(pl.program_id(1) * seq_tile, seq_tile)
        x_q = x_ref[pl.ds(start, seq_tile), :].astype(f32)
        q_t = q_cache[:, pl.ds(start, seq_tile), :]           # (H, TLq, dh)

    num_kv = L // kv_tile
    if num_kv == 1:
        # Single K/V chunk: plain softmax (exact max-shift).
        s = jnp.einsum("hqd,hkd->hqk", q_t, k_cache[...],
                       preferred_element_type=f32)            # (H, TLq, L)
        s = s - jnp.max(s, axis=-1, keepdims=True)
        p = jnp.exp(s)
        p = p * pl.reciprocal(jnp.sum(p, axis=-1, keepdims=True), approx=True)
        ctx = jnp.einsum("hqk,hkd->hqd", p.astype(cdt), v_cache[...],
                         preferred_element_type=f32)          # (H, TLq, dh)
    else:
        # Flash-style online softmax over K/V chunks: bounds the score
        # materialization to (H, TLq, kv_tile) regardless of L.
        def kv_step(i, carry):
            m_i, l_i, acc = carry
            ks = pl.multiple_of(i * kv_tile, kv_tile)
            k_c = k_cache[:, pl.ds(ks, kv_tile), :]
            v_c = v_cache[:, pl.ds(ks, kv_tile), :]
            s = jnp.einsum("hqd,hkd->hqk", q_t, k_c,
                           preferred_element_type=f32)
            m_new = jnp.maximum(m_i, jnp.max(s, axis=-1, keepdims=True))
            alpha = jnp.exp(m_i - m_new)
            p = jnp.exp(s - m_new)
            l_new = alpha * l_i + jnp.sum(p, axis=-1, keepdims=True)
            acc_new = alpha * acc + jnp.einsum(
                "hqk,hkd->hqd", p.astype(cdt), v_c,
                preferred_element_type=f32)
            return m_new, l_new, acc_new

        m0 = jnp.full((H, seq_tile, 1), -1e30, f32)
        l0 = jnp.zeros((H, seq_tile, 1), f32)
        a0 = jnp.zeros((H, seq_tile, dh), f32)
        _, l_i, acc = jax.lax.fori_loop(0, num_kv, kv_step, (m0, l0, a0))
        ctx = acc * pl.reciprocal(l_i, approx=True)

    # Merge heads back to (TLq, C).  The split cost was amortized into the
    # per-batch-element cache build; this is the only per-tile head relayout.
    ctx_m = jnp.concatenate([ctx[h] for h in range(H)], axis=-1)
    attn_out = (jnp.dot(ctx_m.astype(cdt), wo_ref[...],
                        preferred_element_type=f32) + bo_ref[...])

    xr = x_q + attn_out                       # residual (DropPath=identity, eval)

    # ---------------- MLP branch ----------------
    x3 = _layernorm(xr, g2_ref[...], b2_ref[...])
    h1 = (jnp.dot(x3.astype(cdt), w1_ref[...],
                  preferred_element_type=f32) + fb1_ref[...])
    h1 = _gelu(h1, approx_gelu)
    h2 = (jnp.dot(h1.astype(cdt), w2_ref[...],
                  preferred_element_type=f32) + fb2_ref[...])

    o_ref[...] = (xr + h2).astype(o_ref.dtype)


def _vmem_limit_bytes():
    # Derive the scoped VMEM limit from the actual chip (64 MiB on v7x,
    # 128 MiB on v5e/v6e) instead of hard-coding, with a safe fallback.
    try:
        cap = int(pltpu.get_tpu_info().vmem_capacity_bytes)
    except Exception:
        cap = 64 * 1024 * 1024
    return max(32 * 1024 * 1024, min((cap * 3) // 4, 112 * 1024 * 1024))


def encoder_block(x, params, num_heads, *, seq_tile=None, kv_tile=None,
                  compute_dtype=None, approx_gelu=False):
    B, L, C = x.shape
    if compute_dtype is None:
        compute_dtype = x.dtype
    cd = compute_dtype
    if seq_tile is None or seq_tile >= L:
        seq_tile = L
    if kv_tile is None or kv_tile >= L:
        kv_tile = L
    assert L % seq_tile == 0 and (seq_tile == L or seq_tile % 8 == 0)
    assert L % kv_tile == 0 and (kv_tile == L or kv_tile % 8 == 0)
    num_lq = L // seq_tile
    H = num_heads
    dh = C // H
    hidden = params["w1"].shape[0]

    # Host-side (one-time): fuse Wq/Wk/Wv into one (C, 3C) weight, transpose
    # all matmul weights to (in, out), cast them to the compute dtype.
    wqkv = jnp.concatenate(
        [params["wq"].T, params["wk"].T, params["wv"].T], axis=1).astype(cd)
    bqkv = jnp.concatenate([params["bq"], params["bk"], params["bv"]], axis=1)

    args = [
        params["g1"], params["b1"],
        wqkv, bqkv,
        params["wo"].T.astype(cd), params["bo"],
        params["g2"], params["b2"],
        params["w1"].T.astype(cd), params["fb1"],
        params["w2"].T.astype(cd), params["fb2"],
    ]

    flops = B * (2 * L * C * 3 * C        # fused qkv projection
                 + 4 * L * L * C          # q@k^T + p@v
                 + 2 * L * C * C          # output projection
                 + 4 * L * C * hidden)    # mlp fc1 + fc2
    transcend = B * (H * L * L + L * hidden)
    bytes_acc = (2 * int(x.size) * x.dtype.itemsize
                 + sum(int(a.size) * a.dtype.itemsize for a in args))
    cost = pl.CostEstimate(flops=int(flops), transcendentals=int(transcend),
                           bytes_accessed=int(bytes_acc))

    kern = functools.partial(encoder_block_kernel, num_heads=H,
                             seq_tile=seq_tile, kv_tile=kv_tile,
                             approx_gelu=approx_gelu)

    scratch = [pltpu.VMEM((H, L, dh), cd),    # q cache (scaled, per head)
               pltpu.VMEM((H, L, dh), cd),    # k cache
               pltpu.VMEM((H, L, dh), cd)]    # v cache

    def make_call(weight_mode):
        # x: full sequence per batch element; block index constant across the
        # seq-tile axis, so it is DMA'd once per batch element.
        in_specs = [pl.BlockSpec((None, L, C), lambda b, l: (b, 0, 0))]
        for a in args:   # constant-index full-array blocks (weights / LN params)
            if weight_mode is None:
                in_specs.append(pl.BlockSpec(a.shape, lambda b, l: (0, 0)))
            else:
                # Never change across the grid -> single-buffer to save VMEM.
                in_specs.append(pl.BlockSpec(a.shape, lambda b, l: (0, 0),
                                             pipeline_mode=weight_mode))
        return pl.pallas_call(
            kern,
            out_shape=jax.ShapeDtypeStruct((B, L, C), x.dtype),
            grid_spec=pltpu.PrefetchScalarGridSpec(
                num_scalar_prefetch=0,
                grid=(B, num_lq),
                in_specs=in_specs,
                out_specs=pl.BlockSpec((None, seq_tile, C),
                                       lambda b, l: (b, l, 0)),
                scratch_shapes=scratch),
            compiler_params=pltpu.CompilerParams(
                # seq-tile axis is "arbitrary" so the per-batch-element Q/K/V
                # caches built at l==0 stay valid for the remaining tiles.
                dimension_semantics=("parallel", "arbitrary"),
                vmem_limit_bytes=_vmem_limit_bytes()),
            cost_estimate=cost)

    try:
        return make_call(pl.Buffered(1))(x, *args)
    except Exception:
        # Fallback for jax builds that reject single-buffered constant blocks.
        return make_call(None)(x, *args)


def ref_encoder_block(x, p, num_heads):
    # Pure-JAX reference mirroring the PyTorch forward (eval mode).
    def ln(v, g, b):
        mu = v.mean(-1, keepdims=True)
        var = ((v - mu) ** 2).mean(-1, keepdims=True)
        return (v - mu) / jnp.sqrt(var + 1e-5) * g + b

    B, L, C = x.shape
    dh = C // num_heads
    x2 = ln(x, p["g1"][0], p["b1"][0])
    q = x2 @ p["wq"].T + p["bq"][0]
    k = x2 @ p["wk"].T + p["bk"][0]
    v = x2 @ p["wv"].T + p["bv"][0]
    qh = q.reshape(B, L, num_heads, dh).transpose(0, 2, 1, 3)
    kh = k.reshape(B, L, num_heads, dh).transpose(0, 2, 1, 3)
    vh = v.reshape(B, L, num_heads, dh).transpose(0, 2, 1, 3)
    attn = (qh / dh ** 0.5) @ kh.transpose(0, 1, 3, 2)
    attn = jax.nn.softmax(attn, axis=-1)
    o = (attn @ vh).transpose(0, 2, 1, 3).reshape(B, L, C)
    o = o @ p["wo"].T + p["bo"][0]
    x = x + o
    x3 = ln(x, p["g2"][0], p["b2"][0])
    h = jax.nn.gelu(x3 @ p["w1"].T + p["fb1"][0], approximate=False)
    h = h @ p["w2"].T + p["fb2"][0]
    return x + h


def init_params(key, dim, num_heads, mlp_ratio=4.0):
    hidden = int(dim * mlp_ratio)
    ks = jax.random.split(key, 12)
    s = 0.02
    params = {
        "g1": 1.0 + 0.1 * jax.random.normal(ks[0], (1, dim), jnp.float32),
        "b1": 0.05 * jax.random.normal(ks[1], (1, dim), jnp.float32),
        "wq": s * jax.random.normal(ks[2], (dim, dim), jnp.float32),
        "bq": 0.01 * jax.random.normal(ks[3], (1, dim), jnp.float32),
        "wk": s * jax.random.normal(ks[4], (dim, dim), jnp.float32),
        "bk": 0.01 * jax.random.normal(ks[5], (1, dim), jnp.float32),
        "wv": s * jax.random.normal(ks[6], (dim, dim), jnp.float32),
        "bv": 0.01 * jax.random.normal(ks[7], (1, dim), jnp.float32),
        "wo": s * jax.random.normal(ks[8], (dim, dim), jnp.float32),
        "bo": 0.01 * jax.random.normal(ks[9], (1, dim), jnp.float32),
        "g2": 1.0 + 0.1 * jax.random.normal(ks[10], (1, dim), jnp.float32),
        "b2": 0.05 * jax.random.normal(ks[11], (1, dim), jnp.float32),
    }
    ks2 = jax.random.split(jax.random.fold_in(key, 123), 4)
    params["w1"] = s * jax.random.normal(ks2[0], (hidden, dim), jnp.float32)
    params["fb1"] = 0.01 * jax.random.normal(ks2[1], (1, hidden), jnp.float32)
    params["w2"] = s * jax.random.normal(ks2[2], (dim, hidden), jnp.float32)
    params["fb2"] = 0.01 * jax.random.normal(ks2[3], (1, dim), jnp.float32)
    return params


if __name__ == "__main__":
    key = jax.random.PRNGKey(0)

    # --- config 1: tiny shapes from the spec, full-f32 compute, single tile --
    B, N, T = 2, 2, 4                  # L = N*T = 8
    dim, num_heads = 32, 4
    L = N * T
    kx, kp, key = jax.random.split(key, 3)
    x = jax.random.normal(kx, (B, L, dim), jnp.float32)
    params = init_params(kp, dim, num_heads)

    out = jax.block_until_ready(
        encoder_block(x, params, num_heads, compute_dtype=jnp.float32))
    ref = jax.block_until_ready(ref_encoder_block(x, params, num_heads))
    assert out.shape == (B, L, dim)
    assert jnp.allclose(out, ref, rtol=2e-3, atol=2e-3), (
        float(jnp.max(jnp.abs(out - ref))))

    # --- config 2: seq-tiled grid (2 query tiles, cached K/V) + online
    #     softmax over 2 K/V chunks + bf16 matmul operands --------------------
    B2, L2, dim2, heads2 = 2, 256, 128, 4
    kx2, kp2 = jax.random.split(key)
    x2 = jax.random.normal(kx2, (B2, L2, dim2), jnp.float32)
    params2 = init_params(kp2, dim2, heads2)
    out2 = jax.block_until_ready(
        encoder_block(x2, params2, heads2, seq_tile=128, kv_tile=128,
                      compute_dtype=jnp.bfloat16))
    ref2 = jax.block_until_ready(ref_encoder_block(x2, params2, heads2))
    assert out2.shape == (B2, L2, dim2)
    assert jnp.allclose(out2, ref2, rtol=5e-2, atol=5e-2), (
        float(jnp.max(jnp.abs(out2 - ref2))))

    print("KERNEL_OK")
</pallas_src>

<mosaic_0001>
module attributes {stable_mosaic.version = 11 : i64} {
  func.func @encoder_block_kernel(%arg0: i32, %arg1: i32, %arg2: memref<1x8x32xf32, #tpu.memory_space<vmem>>, %arg3: memref<1x32xf32, #tpu.memory_space<vmem>>, %arg4: memref<1x32xf32, #tpu.memory_space<vmem>>, %arg5: memref<32x96xf32, #tpu.memory_space<vmem>>, %arg6: memref<1x96xf32, #tpu.memory_space<vmem>>, %arg7: memref<32x32xf32, #tpu.memory_space<vmem>>, %arg8: memref<1x32xf32, #tpu.memory_space<vmem>>, %arg9: memref<1x32xf32, #tpu.memory_space<vmem>>, %arg10: memref<1x32xf32, #tpu.memory_space<vmem>>, %arg11: memref<32x128xf32, #tpu.memory_space<vmem>>, %arg12: memref<1x128xf32, #tpu.memory_space<vmem>>, %arg13: memref<128x32xf32, #tpu.memory_space<vmem>>, %arg14: memref<1x32xf32, #tpu.memory_space<vmem>>, %arg15: memref<1x8x32xf32, #tpu.memory_space<vmem>>, %arg16: memref<4x8x8xf32, #tpu.memory_space<vmem>>, %arg17: memref<4x8x8xf32, #tpu.memory_space<vmem>>, %arg18: memref<4x8x8xf32, #tpu.memory_space<vmem>>) attributes {dimension_semantics = [#tpu.dimension_semantics<parallel>, #tpu.dimension_semantics<arbitrary>], iteration_bounds = array<i64: 2, 1>, scalar_prefetch = 0 : i64, scratch_operands = 3 : i64, tpu.core_type = #tpu.core_type<tc>, window_params = [{transform_indices = @transform_0, window_bounds = array<i64: 1, 8, 32>}, {pipeline_mode = #tpu.pipeline_mode<synchronous>, transform_indices = @transform_1, window_bounds = array<i64: 1, 32>}, {pipeline_mode = #tpu.pipeline_mode<synchronous>, transform_indices = @transform_2, window_bounds = array<i64: 1, 32>}, {pipeline_mode = #tpu.pipeline_mode<synchronous>, transform_indices = @transform_3, window_bounds = array<i64: 32, 96>}, {pipeline_mode = #tpu.pipeline_mode<synchronous>, transform_indices = @transform_4, window_bounds = array<i64: 1, 96>}, {pipeline_mode = #tpu.pipeline_mode<synchronous>, transform_indices = @transform_5, window_bounds = array<i64: 32, 32>}, {pipeline_mode = #tpu.pipeline_mode<synchronous>, transform_indices = @transform_6, window_bounds = array<i64: 1, 32>}, {pipeline_mode = #tpu.pipeline_mode<synchronous>, transform_indices = @transform_7, window_bounds = array<i64: 1, 32>}, {pipeline_mode = #tpu.pipeline_mode<synchronous>, transform_indices = @transform_8, window_bounds = array<i64: 1, 32>}, {pipeline_mode = #tpu.pipeline_mode<synchronous>, transform_indices = @transform_9, window_bounds = array<i64: 32, 128>}, {pipeline_mode = #tpu.pipeline_mode<synchronous>, transform_indices = @transform_10, window_bounds = array<i64: 1, 128>}, {pipeline_mode = #tpu.pipeline_mode<synchronous>, transform_indices = @transform_11, window_bounds = array<i64: 128, 32>}, {pipeline_mode = #tpu.pipeline_mode<synchronous>, transform_indices = @transform_12, window_bounds = array<i64: 1, 32>}, {transform_indices = @transform_13, window_bounds = array<i64: 1, 8, 32>}]} {
    %c0_i32 = arith.constant 0 : i32
    %0 = arith.cmpi eq, %arg1, %c0_i32 : i32
    %1 = arith.extui %0 : i1 to i32
    %cst = arith.constant 0.353553385 : f32
    %c0_i32_0 = arith.constant 0 : i32
    %2 = arith.cmpi ne, %1, %c0_i32_0 : i32
    scf.if %2 {
      %c0_46 = arith.constant 0 : index
      %c0_47 = arith.constant 0 : index
      %c0_48 = arith.constant 0 : index
      %81 = vector.load %arg2[%c0_46, %c0_47, %c0_48] : memref<1x8x32xf32, #tpu.memory_space<vmem>>, vector<1x8x32xf32>
      %82 = vector.shape_cast %81 : vector<1x8x32xf32> to vector<8x32xf32>
      %c0_49 = arith.constant 0 : index
      %c0_50 = arith.constant 0 : index
      %83 = vector.load %arg3[%c0_49, %c0_50] : memref<1x32xf32, #tpu.memory_space<vmem>>, vector<1x32xf32>
      %c0_51 = arith.constant 0 : index
      %c0_52 = arith.constant 0 : index
      %84 = vector.load %arg4[%c0_51, %c0_52] : memref<1x32xf32, #tpu.memory_space<vmem>>, vector<1x32xf32>
      %cst_53 = arith.constant dense<0.000000e+00> : vector<8xf32>
      %85 = vector.multi_reduction <add>, %82, %cst_53 [1] : vector<8x32xf32> to vector<8xf32>
      %86 = vector.shape_cast %85 : vector<8xf32> to vector<8x1xf32>
      %cst_54 = arith.constant 3.200000e+01 : f32
      %87 = vector.broadcast %cst_54 : f32 to vector<8x1xf32>
      %88 = arith.divf %86, %87 : vector<8x1xf32>
      %89 = vector.broadcast %88 : vector<8x1xf32> to vector<8x32xf32>
      %90 = arith.subf %82, %89 : vector<8x32xf32>
      %91 = arith.mulf %90, %90 : vector<8x32xf32>
      %cst_55 = arith.constant dense<0.000000e+00> : vector<8xf32>
      %92 = vector.multi_reduction <add>, %91, %cst_55 [1] : vector<8x32xf32> to vector<8xf32>
      %93 = vector.shape_cast %92 : vector<8xf32> to vector<8x1xf32>
      %cst_56 = arith.constant 3.200000e+01 : f32
      %94 = vector.broadcast %cst_56 : f32 to vector<8x1xf32>
      %95 = arith.divf %93, %94 : vector<8x1xf32>
      %96 = vector.broadcast %88 : vector<8x1xf32> to vector<8x32xf32>
      %97 = arith.subf %82, %96 : vector<8x32xf32>
      %cst_57 = arith.constant 9.99999974E-6 : f32
      %98 = vector.broadcast %cst_57 : f32 to vector<8x1xf32>
      %99 = arith.addf %95, %98 : vector<8x1xf32>
      %100 = math.rsqrt %99 : vector<8x1xf32>
      %101 = vector.broadcast %100 : vector<8x1xf32> to vector<8x32xf32>
      %102 = arith.mulf %97, %101 : vector<8x32xf32>
      %103 = vector.broadcast %83 : vector<1x32xf32> to vector<8x32xf32>
      %104 = arith.mulf %102, %103 : vector<8x32xf32>
      %105 = vector.broadcast %84 : vector<1x32xf32> to vector<8x32xf32>
      %106 = arith.addf %104, %105 : vector<8x32xf32>
      %c0_58 = arith.constant 0 : index
      %c0_59 = arith.constant 0 : index
      %107 = vector.load %arg5[%c0_58, %c0_59] : memref<32x96xf32, #tpu.memory_space<vmem>>, vector<32x96xf32>
      %cst_60 = arith.constant dense<0.000000e+00> : vector<8x96xf32>
      %108 = tpu.matmul %106, %107, %cst_60 {dimension_numbers = #tpu.dot_dimension_numbers<[1], [0], [0], [1], [0, 0, 1, 1], [], []>} : vector<8x32xf32>, vector<32x96xf32>, vector<8x96xf32> -> vector<8x96xf32>
      %c0_61 = arith.constant 0 : index
      %c0_62 = arith.constant 0 : index
      %109 = vector.load %arg6[%c0_61, %c0_62] : memref<1x96xf32, #tpu.memory_space<vmem>>, vector<1x96xf32>
      %110 = vector.broadcast %109 : vector<1x96xf32> to vector<8x96xf32>
      %111 = arith.addf %108, %110 : vector<8x96xf32>
      %112 = vector.extract_strided_slice %111 {offsets = [0, 0], sizes = [8, 32], strides = [1, 1]} : vector<8x96xf32> to vector<8x32xf32>
      %113 = vector.broadcast %cst : f32 to vector<8x32xf32>
      %114 = arith.mulf %112, %113 : vector<8x32xf32>
      %115 = vector.extract_strided_slice %111 {offsets = [0, 32], sizes = [8, 32], strides = [1, 1]} : vector<8x96xf32> to vector<8x32xf32>
      %116 = vector.extract_strided_slice %111 {offsets = [0, 64], sizes = [8, 32], strides = [1, 1]} : vector<8x96xf32> to vector<8x32xf32>
      %117 = vector.extract_strided_slice %114 {offsets = [0, 0], sizes = [8, 8], strides = [1, 1]} : vector<8x32xf32> to vector<8x8xf32>
      %c0_63 = arith.constant 0 : index
      %c0_64 = arith.constant 0 : index
      %c0_65 = arith.constant 0 : index
      %118 = vector.load %arg16[%c0_63, %c0_64, %c0_65] : memref<4x8x8xf32, #tpu.memory_space<vmem>>, vector<1x8x8xf32>
      %119 = vector.shape_cast %118 : vector<1x8x8xf32> to vector<8x8xf32>
      %120 = vector.shape_cast %117 : vector<8x8xf32> to vector<1x8x8xf32>
      tpu.vector_store %arg16[%c0_63, %c0_64, %c0_65], %120 {strides = array<i32>} : memref<4x8x8xf32, #tpu.memory_space<vmem>>, vector<1x8x8xf32>,
      %121 = vector.extract_strided_slice %115 {offsets = [0, 0], sizes = [8, 8], strides = [1, 1]} : vector<8x32xf32> to vector<8x8xf32>
      %c0_66 = arith.constant 0 : index
      %c0_67 = arith.constant 0 : index
      %c0_68 = arith.constant 0 : index
      %122 = vector.load %arg17[%c0_66, %c0_67, %c0_68] : memref<4x8x8xf32, #tpu.memory_space<vmem>>, vector<1x8x8xf32>
      %123 = vector.shape_cast %122 : vector<1x8x8xf32> to vector<8x8xf32>
      %124 = vector.shape_cast %121 : vector<8x8xf32> to vector<1x8x8xf32>
      tpu.vector_store %arg17[%c0_66, %c0_67, %c0_68], %124 {strides = array<i32>} : memref<4x8x8xf32, #tpu.memory_space<vmem>>, vector<1x8x8xf32>,
      %125 = vector.extract_strided_slice %116 {offsets = [0, 0], sizes = [8, 8], strides = [1, 1]} : vector<8x32xf32> to vector<8x8xf32>
      %c0_69 = arith.constant 0 : index
      %c0_70 = arith.constant 0 : index
      %c0_71 = arith.constant 0 : index
      %126 = vector.load %arg18[%c0_69, %c0_70, %c0_71] : memref<4x8x8xf32, #tpu.memory_space<vmem>>, vector<1x8x8xf32>
      %127 = vector.shape_cast %126 : vector<1x8x8xf32> to vector<8x8xf32>
      %128 = vector.shape_cast %125 : vector<8x8xf32> to vector<1x8x8xf32>
      tpu.vector_store %arg18[%c0_69, %c0_70, %c0_71], %128 {strides = array<i32>} : memref<4x8x8xf32, #tpu.memory_space<vmem>>, vector<1x8x8xf32>,
      %129 = vector.extract_strided_slice %114 {offsets = [0, 8], sizes = [8, 8], strides = [1, 1]} : vector<8x32xf32> to vector<8x8xf32>
      %c1 = arith.constant 1 : index
      %c0_72 = arith.constant 0 : index
      %c0_73 = arith.constant 0 : index
      %130 = vector.load %arg16[%c1, %c0_72, %c0_73] : memref<4x8x8xf32, #tpu.memory_space<vmem>>, vector<1x8x8xf32>
      %131 = vector.shape_cast %130 : vector<1x8x8xf32> to vector<8x8xf32>
      %132 = vector.shape_cast %129 : vector<8x8xf32> to vector<1x8x8xf32>
      tpu.vector_store %arg16[%c1, %c0_72, %c0_73], %132 {strides = array<i32>} : memref<4x8x8xf32, #tpu.memory_space<vmem>>, vector<1x8x8xf32>,
      %133 = vector.extract_strided_slice %115 {offsets = [0, 8], sizes = [8, 8], strides = [1, 1]} : vector<8x32xf32> to vector<8x8xf32>
      %c1_74 = arith.constant 1 : index
      %c0_75 = arith.constant 0 : index
      %c0_76 = arith.constant 0 : index
      %134 = vector.load %arg17[%c1_74, %c0_75, %c0_76] : memref<4x8x8xf32, #tpu.memory_space<vmem>>, vector<1x8x8xf32>
      %135 = vector.shape_cast %134 : vector<1x8x8xf32> to vector<8x8xf32>
      %136 = vector.shape_cast %133 : vector<8x8xf32> to vector<1x8x8xf32>
      tpu.vector_store %arg17[%c1_74, %c0_75, %c0_76], %136 {strides = array<i32>} : memref<4x8x8xf32, #tpu.memory_space<vmem>>, vector<1x8x8xf32>,
      %137 = vector.extract_strided_slice %116 {offsets = [0, 8], sizes = [8, 8], strides = [1, 1]} : vector<8x32xf32> to vector<8x8xf32>
      %c1_77 = arith.constant 1 : index
      %c0_78 = arith.constant 0 : index
      %c0_79 = arith.constant 0 : index
      %138 = vector.load %arg18[%c1_77, %c0_78, %c0_79] : memref<4x8x8xf32, #tpu.memory_space<vmem>>, vector<1x8x8xf32>
      %139 = vector.shape_cast %138 : vector<1x8x8xf32> to vector<8x8xf32>
      %140 = vector.shape_cast %137 : vector<8x8xf32> to vector<1x8x8xf32>
      tpu.vector_store %arg18[%c1_77, %c0_78, %c0_79], %140 {strides = array<i32>} : memref<4x8x8xf32, #tpu.memory_space<vmem>>, vector<1x8x8xf32>,
      %141 = vector.extract_strided_slice %114 {offsets = [0, 16], sizes = [8, 8], strides = [1, 1]} : vector<8x32xf32> to vector<8x8xf32>
      %c2 = arith.constant 2 : index
      %c0_80 = arith.constant 0 : index
      %c0_81 = arith.constant 0 : index
      %142 = vector.load %arg16[%c2, %c0_80, %c0_81] : memref<4x8x8xf32, #tpu.memory_space<vmem>>, vector<1x8x8xf32>
      %143 = vector.shape_cast %142 : vector<1x8x8xf32> to vector<8x8xf32>
      %144 = vector.shape_cast %141 : vector<8x8xf32> to vector<1x8x8xf32>
      tpu.vector_store %arg16[%c2, %c0_80, %c0_81], %144 {strides = array<i32>} : memref<4x8x8xf32, #tpu.memory_space<vmem>>, vector<1x8x8xf32>,
      %145 = vector.extract_strided_slice %115 {offsets = [0, 16], sizes = [8, 8], strides = [1, 1]} : vector<8x32xf32> to vector<8x8xf32>
      %c2_82 = arith.constant 2 : index
      %c0_83 = arith.constant 0 : index
      %c0_84 = arith.constant 0 : index
      %146 = vector.load %arg17[%c2_82, %c0_83, %c0_84] : memref<4x8x8xf32, #tpu.memory_space<vmem>>, vector<1x8x8xf32>
      %147 = vector.shape_cast %146 : vector<1x8x8xf32> to vector<8x8xf32>
      %148 = vector.shape_cast %145 : vector<8x8xf32> to vector<1x8x8xf32>
      tpu.vector_store %arg17[%c2_82, %c0_83, %c0_84], %148 {strides = array<i32>} : memref<4x8x8xf32, #tpu.memory_space<vmem>>, vector<1x8x8xf32>,
      %149 = vector.extract_strided_slice %116 {offsets = [0, 16], sizes = [8, 8], strides = [1, 1]} : vector<8x32xf32> to vector<8x8xf32>
      %c2_85 = arith.constant 2 : index
      %c0_86 = arith.constant 0 : index
      %c0_87 = arith.constant 0 : index
      %150 = vector.load %arg18[%c2_85, %c0_86, %c0_87] : memref<4x8x8xf32, #tpu.memory_space<vmem>>, vector<1x8x8xf32>
      %151 = vector.shape_cast %150 : vector<1x8x8xf32> to vector<8x8xf32>
      %152 = vector.shape_cast %149 : vector<8x8xf32> to vector<1x8x8xf32>
      tpu.vector_store %arg18[%c2_85, %c0_86, %c0_87], %152 {strides = array<i32>} : memref<4x8x8xf32, #tpu.memory_space<vmem>>, vector<1x8x8xf32>,
      %153 = vector.extract_strided_slice %114 {offsets = [0, 24], sizes = [8, 8], strides = [1, 1]} : vector<8x32xf32> to vector<8x8xf32>
      %c3 = arith.constant 3 : index
      %c0_88 = arith.constant 0 : index
      %c0_89 = arith.constant 0 : index
      %154 = vector.load %arg16[%c3, %c0_88, %c0_89] : memref<4x8x8xf32, #tpu.memory_space<vmem>>, vector<1x8x8xf32>
      %155 = vector.shape_cast %154 : vector<1x8x8xf32> to vector<8x8xf32>
      %156 = vector.shape_cast %153 : vector<8x8xf32> to vector<1x8x8xf32>
      tpu.vector_store %arg16[%c3, %c0_88, %c0_89], %156 {strides = array<i32>} : memref<4x8x8xf32, #tpu.memory_space<vmem>>, vector<1x8x8xf32>,
      %157 = vector.extract_strided_slice %115 {offsets = [0, 24], sizes = [8, 8], strides = [1, 1]} : vector<8x32xf32> to vector<8x8xf32>
      %c3_90 = arith.constant 3 : index
      %c0_91 = arith.constant 0 : index
      %c0_92 = arith.constant 0 : index
      %158 = vector.load %arg17[%c3_90, %c0_91, %c0_92] : memref<4x8x8xf32, #tpu.memory_space<vmem>>, vector<1x8x8xf32>
      %159 = vector.shape_cast %158 : vector<1x8x8xf32> to vector<8x8xf32>
      %160 = vector.shape_cast %157 : vector<8x8xf32> to vector<1x8x8xf32>
      tpu.vector_store %arg17[%c3_90, %c0_91, %c0_92], %160 {strides = array<i32>} : memref<4x8x8xf32, #tpu.memory_space<vmem>>, vector<1x8x8xf32>,
      %161 = vector.extract_strided_slice %116 {offsets = [0, 24], sizes = [8, 8], strides = [1, 1]} : vector<8x32xf32> to vector<8x8xf32>
      %c3_93 = arith.constant 3 : index
      %c0_94 = arith.constant 0 : index
      %c0_95 = arith.constant 0 : index
      %162 = vector.load %arg18[%c3_93, %c0_94, %c0_95] : memref<4x8x8xf32, #tpu.memory_space<vmem>>, vector<1x8x8xf32>
      %163 = vector.shape_cast %162 : vector<1x8x8xf32> to vector<8x8xf32>
      %164 = vector.shape_cast %161 : vector<8x8xf32> to vector<1x8x8xf32>
      tpu.vector_store %arg18[%c3_93, %c0_94, %c0_95], %164 {strides = array<i32>} : memref<4x8x8xf32, #tpu.memory_space<vmem>>, vector<1x8x8xf32>,
    } else {
    }
    %c0 = arith.constant 0 : index
    %c0_1 = arith.constant 0 : index
    %c0_2 = arith.constant 0 : index
    %3 = vector.load %arg2[%c0, %c0_1, %c0_2] : memref<1x8x32xf32, #tpu.memory_space<vmem>>, vector<1x8x32xf32>
    %4 = vector.shape_cast %3 : vector<1x8x32xf32> to vector<8x32xf32>
    %c0_3 = arith.constant 0 : index
    %c0_4 = arith.constant 0 : index
    %c0_5 = arith.constant 0 : index
    %5 = vector.load %arg16[%c0_3, %c0_4, %c0_5] : memref<4x8x8xf32, #tpu.memory_space<vmem>>, vector<4x8x8xf32>
    %c0_6 = arith.constant 0 : index
    %c0_7 = arith.constant 0 : index
    %c0_8 = arith.constant 0 : index
    %6 = vector.load %arg17[%c0_6, %c0_7, %c0_8] : memref<4x8x8xf32, #tpu.memory_space<vmem>>, vector<4x8x8xf32>
    "tpu.trace_start"() <{level = 10 : i32, message = "hqd,hkd->hqk"}> : () -> ()
    %cst_9 = arith.constant dense<0.000000e+00> : vector<4x8x8xf32>
    %7 = tpu.matmul %5, %6, %cst_9 {dimension_numbers = #tpu.dot_dimension_numbers<[2], [2], [1], [1], [0, 0, 0, 1, 1, 1], [0], [0]>} : vector<4x8x8xf32>, vector<4x8x8xf32>, vector<4x8x8xf32> -> vector<4x8x8xf32>
    "tpu.trace_stop"() : () -> ()
    %cst_10 = arith.constant dense<0xFF800000> : vector<4x8xf32>
    %8 = vector.multi_reduction <maximumf>, %7, %cst_10 [2] : vector<4x8x8xf32> to vector<4x8xf32>
    %9 = vector.shape_cast %8 : vector<4x8xf32> to vector<4x8x1xf32>
    %10 = vector.broadcast %9 : vector<4x8x1xf32> to vector<4x8x8xf32>
    %11 = arith.subf %7, %10 : vector<4x8x8xf32>
    %12 = math.exp %11 : vector<4x8x8xf32>
    %cst_11 = arith.constant dense<0.000000e+00> : vector<4x8xf32>
    %13 = vector.multi_reduction <add>, %12, %cst_11 [2] : vector<4x8x8xf32> to vector<4x8xf32>
    %14 = vector.shape_cast %13 : vector<4x8xf32> to vector<4x8x1xf32>
    %15 = tpu.reciprocal %14 {approx = true} : vector<4x8x1xf32> -> vector<4x8x1xf32>
    %16 = vector.broadcast %15 : vector<4x8x1xf32> to vector<4x8x8xf32>
    %17 = arith.mulf %12, %16 : vector<4x8x8xf32>
    %c0_12 = arith.constant 0 : index
    %c0_13 = arith.constant 0 : index
    %c0_14 = arith.constant 0 : index
    %18 = vector.load %arg18[%c0_12, %c0_13, %c0_14] : memref<4x8x8xf32, #tpu.memory_space<vmem>>, vector<4x8x8xf32>
    "tpu.trace_start"() <{level = 10 : i32, message = "hqk,hkd->hqd"}> : () -> ()
    %cst_15 = arith.constant dense<0.000000e+00> : vector<4x8x8xf32>
    %19 = tpu.matmul %17, %18, %cst_15 {dimension_numbers = #tpu.dot_dimension_numbers<[2], [1], [1], [2], [0, 0, 0, 1, 1, 2], [0], [0]>} : vector<4x8x8xf32>, vector<4x8x8xf32>, vector<4x8x8xf32> -> vector<4x8x8xf32>
    "tpu.trace_stop"() : () -> ()
    %20 = vector.extract_strided_slice %19 {offsets = [0, 0, 0], sizes = [1, 8, 8], strides = [1, 1, 1]} : vector<4x8x8xf32> to vector<1x8x8xf32>
    %21 = vector.shape_cast %20 : vector<1x8x8xf32> to vector<8x8xf32>
    %22 = vector.extract_strided_slice %19 {offsets = [1, 0, 0], sizes = [1, 8, 8], strides = [1, 1, 1]} : vector<4x8x8xf32> to vector<1x8x8xf32>
    %23 = vector.shape_cast %22 : vector<1x8x8xf32> to vector<8x8xf32>
    %24 = vector.extract_strided_slice %19 {offsets = [2, 0, 0], sizes = [1, 8, 8], strides = [1, 1, 1]} : vector<4x8x8xf32> to vector<1x8x8xf32>
    %25 = vector.shape_cast %24 : vector<1x8x8xf32> to vector<8x8xf32>
    %26 = vector.extract_strided_slice %19 {offsets = [3, 0, 0], sizes = [1, 8, 8], strides = [1, 1, 1]} : vector<4x8x8xf32> to vector<1x8x8xf32>
    %27 = vector.shape_cast %26 : vector<1x8x8xf32> to vector<8x8xf32>
    %28 = tpu.concatenate %21, %23, %25, %27 in 1 : vector<8x8xf32>, vector<8x8xf32>, vector<8x8xf32>, vector<8x8xf32> -> vector<8x32xf32>
    %c0_16 = arith.constant 0 : index
    %c0_17 = arith.constant 0 : index
    %29 = vector.load %arg7[%c0_16, %c0_17] : memref<32x32xf32, #tpu.memory_space<vmem>>, vector<32x32xf32>
    %cst_18 = arith.constant dense<0.000000e+00> : vector<8x32xf32>
    %30 = tpu.matmul %28, %29, %cst_18 {dimension_numbers = #tpu.dot_dimension_numbers<[1], [0], [0], [1], [0, 0, 1, 1], [], []>} : vector<8x32xf32>, vector<32x32xf32>, vector<8x32xf32> -> vector<8x32xf32>
    %c0_19 = arith.constant 0 : index
    %c0_20 = arith.constant 0 : index
    %31 = vector.load %arg8[%c0_19, %c0_20] : memref<1x32xf32, #tpu.memory_space<vmem>>, vector<1x32xf32>
    %32 = vector.broadcast %31 : vector<1x32xf32> to vector<8x32xf32>
    %33 = arith.addf %30, %32 : vector<8x32xf32>
    %34 = arith.addf %4, %33 : vector<8x32xf32>
    %c0_21 = arith.constant 0 : index
    %c0_22 = arith.constant 0 : index
    %35 = vector.load %arg9[%c0_21, %c0_22] : memref<1x32xf32, #tpu.memory_space<vmem>>, vector<1x32xf32>
    %c0_23 = arith.constant 0 : index
    %c0_24 = arith.constant 0 : index
    %36 = vector.load %arg10[%c0_23, %c0_24] : memref<1x32xf32, #tpu.memory_space<vmem>>, vector<1x32xf32>
    %cst_25 = arith.constant dense<0.000000e+00> : vector<8xf32>
    %37 = vector.multi_reduction <add>, %34, %cst_25 [1] : vector<8x32xf32> to vector<8xf32>
    %38 = vector.shape_cast %37 : vector<8xf32> to vector<8x1xf32>
    %cst_26 = arith.constant 3.200000e+01 : f32
    %39 = vector.broadcast %cst_26 : f32 to vector<8x1xf32>
    %40 = arith.divf %38, %39 : vector<8x1xf32>
    %41 = vector.broadcast %40 : vector<8x1xf32> to vector<8x32xf32>
    %42 = arith.subf %34, %41 : vector<8x32xf32>
    %43 = arith.mulf %42, %42 : vector<8x32xf32>
    %cst_27 = arith.constant dense<0.000000e+00> : vector<8xf32>
    %44 = vector.multi_reduction <add>, %43, %cst_27 [1] : vector<8x32xf32> to vector<8xf32>
    %45 = vector.shape_cast %44 : vector<8xf32> to vector<8x1xf32>
    %cst_28 = arith.constant 3.200000e+01 : f32
    %46 = vector.broadcast %cst_28 : f32 to vector<8x1xf32>
    %47 = arith.divf %45, %46 : vector<8x1xf32>
    %48 = vector.broadcast %40 : vector<8x1xf32> to vector<8x32xf32>
    %49 = arith.subf %34, %48 : vector<8x32xf32>
    %cst_29 = arith.constant 9.99999974E-6 : f32
    %50 = vector.broadcast %cst_29 : f32 to vector<8x1xf32>
    %51 = arith.addf %47, %50 : vector<8x1xf32>
    %52 = math.rsqrt %51 : vector<8x1xf32>
    %53 = vector.broadcast %52 : vector<8x1xf32> to vector<8x32xf32>
    %54 = arith.mulf %49, %53 : vector<8x32xf32>
    %55 = vector.broadcast %35 : vector<1x32xf32> to vector<8x32xf32>
    %56 = arith.mulf %54, %55 : vector<8x32xf32>
    %57 = vector.broadcast %36 : vector<1x32xf32> to vector<8x32xf32>
    %58 = arith.addf %56, %57 : vector<8x32xf32>
    %c0_30 = arith.constant 0 : index
    %c0_31 = arith.constant 0 : index
    %59 = vector.load %arg11[%c0_30, %c0_31] : memref<32x128xf32, #tpu.memory_space<vmem>>, vector<32x128xf32>
    %cst_32 = arith.constant dense<0.000000e+00> : vector<8x128xf32>
    %60 = tpu.matmul %58, %59, %cst_32 {dimension_numbers = #tpu.dot_dimension_numbers<[1], [0], [0], [1], [0, 0, 1, 1], [], []>} : vector<8x32xf32>, vector<32x128xf32>, vector<8x128xf32> -> vector<8x128xf32>
    %c0_33 = arith.constant 0 : index
    %c0_34 = arith.constant 0 : index
    %61 = vector.load %arg12[%c0_33, %c0_34] : memref<1x128xf32, #tpu.memory_space<vmem>>, vector<1x128xf32>
    %62 = vector.broadcast %61 : vector<1x128xf32> to vector<8x128xf32>
    %63 = arith.addf %60, %62 : vector<8x128xf32>
    %cst_35 = arith.constant 5.000000e-01 : f32
    %64 = vector.broadcast %cst_35 : f32 to vector<8x128xf32>
    %65 = arith.mulf %64, %63 : vector<8x128xf32>
    %cst_36 = arith.constant 0.707106769 : f32
    %66 = vector.broadcast %cst_36 : f32 to vector<8x128xf32>
    %67 = arith.mulf %63, %66 : vector<8x128xf32>
    %68 = math.erf %67 : vector<8x128xf32>
    %cst_37 = arith.constant 1.000000e+00 : f32
    %69 = vector.broadcast %cst_37 : f32 to vector<8x128xf32>
    %70 = arith.addf %69, %68 : vector<8x128xf32>
    %71 = arith.mulf %65, %70 : vector<8x128xf32>
    %c0_38 = arith.constant 0 : index
    %c0_39 = arith.constant 0 : index
    %72 = vector.load %arg13[%c0_38, %c0_39] : memref<128x32xf32, #tpu.memory_space<vmem>>, vector<128x32xf32>
    %cst_40 = arith.constant dense<0.000000e+00> : vector<8x32xf32>
    %73 = tpu.matmul %71, %72, %cst_40 {dimension_numbers = #tpu.dot_dimension_numbers<[1], [0], [0], [1], [0, 0, 1, 1], [], []>} : vector<8x128xf32>, vector<128x32xf32>, vector<8x32xf32> -> vector<8x32xf32>
    %c0_41 = arith.constant 0 : index
    %c0_42 = arith.constant 0 : index
    %74 = vector.load %arg14[%c0_41, %c0_42] : memref<1x32xf32, #tpu.memory_space<vmem>>, vector<1x32xf32>
    %75 = vector.broadcast %74 : vector<1x32xf32> to vector<8x32xf32>
    %76 = arith.addf %73, %75 : vector<8x32xf32>
    %77 = arith.addf %34, %76 : vector<8x32xf32>
    %c0_43 = arith.constant 0 : index
    %c0_44 = arith.constant 0 : index
    %c0_45 = arith.constant 0 : index
    %78 = vector.load %arg15[%c0_43, %c0_44, %c0_45] : memref<1x8x32xf32, #tpu.memory_space<vmem>>, vector<1x8x32xf32>
    %79 = vector.shape_cast %78 : vector<1x8x32xf32> to vector<8x32xf32>
    %80 = vector.shape_cast %77 : vector<8x32xf32> to vector<1x8x32xf32>
    tpu.vector_store %arg15[%c0_43, %c0_44, %c0_45], %80 {strides = array<i32>} : memref<1x8x32xf32, #tpu.memory_space<vmem>>, vector<1x8x32xf32>,
    return
  }
  func.func @transform_0(%arg0: i32, %arg1: i32) -> (i32, i32, i32) {
    %c0_i32 = arith.constant 0 : i32
    %c0_i32_0 = arith.constant 0 : i32
    %c0_i32_1 = arith.constant 0 : i32
    return %arg0, %c0_i32, %c0_i32_0 : i32, i32, i32
  }
  func.func @transform_1(%arg0: i32, %arg1: i32) -> (i32, i32) {
    %c0_i32 = arith.constant 0 : i32
    %c0_i32_0 = arith.constant 0 : i32
    %c0_i32_1 = arith.constant 0 : i32
    return %c0_i32, %c0_i32_0 : i32, i32
  }
  func.func @transform_2(%arg0: i32, %arg1: i32) -> (i32, i32) {
    %c0_i32 = arith.constant 0 : i32
    %c0_i32_0 = arith.constant 0 : i32
    %c0_i32_1 = arith.constant 0 : i32
    return %c0_i32, %c0_i32_0 : i32, i32
  }
  func.func @transform_3(%arg0: i32, %arg1: i32) -> (i32, i32) {
    %c0_i32 = arith.constant 0 : i32
    %c0_i32_0 = arith.constant 0 : i32
    %c0_i32_1 = arith.constant 0 : i32
    return %c0_i32, %c0_i32_0 : i32, i32
  }
  func.func @transform_4(%arg0: i32, %arg1: i32) -> (i32, i32) {
    %c0_i32 = arith.constant 0 : i32
    %c0_i32_0 = arith.constant 0 : i32
    %c0_i32_1 = arith.constant 0 : i32
    return %c0_i32, %c0_i32_0 : i32, i32
  }
  func.func @transform_5(%arg0: i32, %arg1: i32) -> (i32, i32) {
    %c0_i32 = arith.constant 0 : i32
    %c0_i32_0 = arith.constant 0 : i32
    %c0_i32_1 = arith.constant 0 : i32
    return %c0_i32, %c0_i32_0 : i32, i32
  }
  func.func @transform_6(%arg0: i32, %arg1: i32) -> (i32, i32) {
    %c0_i32 = arith.constant 0 : i32
    %c0_i32_0 = arith.constant 0 : i32
    %c0_i32_1 = arith.constant 0 : i32
    return %c0_i32, %c0_i32_0 : i32, i32
  }
  func.func @transform_7(%arg0: i32, %arg1: i32) -> (i32, i32) {
    %c0_i32 = arith.constant 0 : i32
    %c0_i32_0 = arith.constant 0 : i32
    %c0_i32_1 = arith.constant 0 : i32
    return %c0_i32, %c0_i32_0 : i32, i32
  }
  func.func @transform_8(%arg0: i32, %arg1: i32) -> (i32, i32) {
    %c0_i32 = arith.constant 0 : i32
    %c0_i32_0 = arith.constant 0 : i32
    %c0_i32_1 = arith.constant 0 : i32
    return %c0_i32, %c0_i32_0 : i32, i32
  }
  func.func @transform_9(%arg0: i32, %arg1: i32) -> (i32, i32) {
    %c0_i32 = arith.constant 0 : i32
    %c0_i32_0 = arith.constant 0 : i32
    %c0_i32_1 = arith.constant 0 : i32
    return %c0_i32, %c0_i32_0 : i32, i32
  }
  func.func @transform_10(%arg0: i32, %arg1: i32) -> (i32, i32) {
    %c0_i32 = arith.constant 0 : i32
    %c0_i32_0 = arith.constant 0 : i32
    %c0_i32_1 = arith.constant 0 : i32
    return %c0_i32, %c0_i32_0 : i32, i32
  }
  func.func @transform_11(%arg0: i32, %arg1: i32) -> (i32, i32) {
    %c0_i32 = arith.constant 0 : i32
    %c0_i32_0 = arith.constant 0 : i32
    %c0_i32_1 = arith.constant 0 : i32
    return %c0_i32, %c0_i32_0 : i32, i32
  }
  func.func @transform_12(%arg0: i32, %arg1: i32) -> (i32, i32) {
    %c0_i32 = arith.constant 0 : i32
    %c0_i32_0 = arith.constant 0 : i32
    %c0_i32_1 = arith.constant 0 : i32
    return %c0_i32, %c0_i32_0 : i32, i32
  }
  func.func @transform_13(%arg0: i32, %arg1: i32) -> (i32, i32, i32) {
    %c0_i32 = arith.constant 0 : i32
    %c0_i32_0 = arith.constant 0 : i32
    return %arg0, %arg1, %c0_i32 : i32, i32, i32
  }
}

module attributes {stable_mosaic.version = 11 : i64} {
  func.func @encoder_block_kernel(%arg0: i32, %arg1: i32, %arg2: memref<1x8x32xf32, #tpu.memory_space<vmem>>, %arg3: memref<1x32xf32, #tpu.memory_space<vmem>>, %arg4: memref<1x32xf32, #tpu.memory_space<vmem>>, %arg5: memref<32x96xf32, #tpu.memory_space<vmem>>, %arg6: memref<1x96xf32, #tpu.memory_space<vmem>>, %arg7: memref<32x32xf32, #tpu.memory_space<vmem>>, %arg8: memref<1x32xf32, #tpu.memory_space<vmem>>, %arg9: memref<1x32xf32, #tpu.memory_space<vmem>>, %arg10: memref<1x32xf32, #tpu.memory_space<vmem>>, %arg11: memref<32x128xf32, #tpu.memory_space<vmem>>, %arg12: memref<1x128xf32, #tpu.memory_space<vmem>>, %arg13: memref<128x32xf32, #tpu.memory_space<vmem>>, %arg14: memref<1x32xf32, #tpu.memory_space<vmem>>, %arg15: memref<1x8x32xf32, #tpu.memory_space<vmem>>, %arg16: memref<4x8x8xf32, #tpu.memory_space<vmem>>, %arg17: memref<4x8x8xf32, #tpu.memory_space<vmem>>, %arg18: memref<4x8x8xf32, #tpu.memory_space<vmem>>) attributes {dimension_semantics = [#tpu.dimension_semantics<parallel>, #tpu.dimension_semantics<arbitrary>], iteration_bounds = array<i64: 2, 1>, scalar_prefetch = 0 : i64, scratch_operands = 3 : i64, tpu.core_type = #tpu.core_type<tc>, window_params = [{transform_indices = @transform_0, window_bounds = array<i64: 1, 8, 32>}, {pipeline_mode = #tpu.pipeline_mode<synchronous>, transform_indices = @transform_1, window_bounds = array<i64: 1, 32>}, {pipeline_mode = #tpu.pipeline_mode<synchronous>, transform_indices = @transform_2, window_bounds = array<i64: 1, 32>}, {pipeline_mode = #tpu.pipeline_mode<synchronous>, transform_indices = @transform_3, window_bounds = array<i64: 32, 96>}, {pipeline_mode = #tpu.pipeline_mode<synchronous>, transform_indices = @transform_4, window_bounds = array<i64: 1, 96>}, {pipeline_mode = #tpu.pipeline_mode<synchronous>, transform_indices = @transform_5, window_bounds = array<i64: 32, 32>}, {pipeline_mode = #tpu.pipeline_mode<synchronous>, transform_indices = @transform_6, window_bounds = array<i64: 1, 32>}, {pipeline_mode = #tpu.pipeline_mode<synchronous>, transform_indices = @transform_7, window_bounds = array<i64: 1, 32>}, {pipeline_mode = #tpu.pipeline_mode<synchronous>, transform_indices = @transform_8, window_bounds = array<i64: 1, 32>}, {pipeline_mode = #tpu.pipeline_mode<synchronous>, transform_indices = @transform_9, window_bounds = array<i64: 32, 128>}, {pipeline_mode = #tpu.pipeline_mode<synchronous>, transform_indices = @transform_10, window_bounds = array<i64: 1, 128>}, {pipeline_mode = #tpu.pipeline_mode<synchronous>, transform_indices = @transform_11, window_bounds = array<i64: 128, 32>}, {pipeline_mode = #tpu.pipeline_mode<synchronous>, transform_indices = @transform_12, window_bounds = array<i64: 1, 32>}, {transform_indices = @transform_13, window_bounds = array<i64: 1, 8, 32>}]} {
    %c0_i32 = arith.constant 0 : i32
    %0 = arith.cmpi eq, %arg1, %c0_i32 : i32
    %1 = arith.extui %0 : i1 to i32
    %cst = arith.constant 0.353553385 : f32
    %c0_i32_0 = arith.constant 0 : i32
    %2 = arith.cmpi ne, %1, %c0_i32_0 : i32
    scf.if %2 {
      %c0_46 = arith.constant 0 : index
      %c0_47 = arith.constant 0 : index
      %c0_48 = arith.constant 0 : index
      %81 = vector.load %arg2[%c0_46, %c0_47, %c0_48] : memref<1x8x32xf32, #tpu.memory_space<vmem>>, vector<1x8x32xf32>
      %82 = vector.shape_cast %81 : vector<1x8x32xf32> to vector<8x32xf32>
      %c0_49 = arith.constant 0 : index
      %c0_50 = arith.constant 0 : index
      %83 = vector.load %arg3[%c0_49, %c0_50] : memref<1x32xf32, #tpu.memory_space<vmem>>, vector<1x32xf32>
      %c0_51 = arith.constant 0 : index
      %c0_52 = arith.constant 0 : index
      %84 = vector.load %arg4[%c0_51, %c0_52] : memref<1x32xf32, #tpu.memory_space<vmem>>, vector<1x32xf32>
      %cst_53 = arith.constant dense<0.000000e+00> : vector<8xf32>
      %85 = vector.multi_reduction <add>, %82, %cst_53 [1] : vector<8x32xf32> to vector<8xf32>
      %86 = vector.shape_cast %85 : vector<8xf32> to vector<8x1xf32>
      %cst_54 = arith.constant 3.200000e+01 : f32
      %87 = vector.broadcast %cst_54 : f32 to vector<8x1xf32>
      %88 = arith.divf %86, %87 : vector<8x1xf32>
      %89 = vector.broadcast %88 : vector<8x1xf32> to vector<8x32xf32>
      %90 = arith.subf %82, %89 : vector<8x32xf32>
      %91 = arith.mulf %90, %90 : vector<8x32xf32>
      %cst_55 = arith.constant dense<0.000000e+00> : vector<8xf32>
      %92 = vector.multi_reduction <add>, %91, %cst_55 [1] : vector<8x32xf32> to vector<8xf32>
      %93 = vector.shape_cast %92 : vector<8xf32> to vector<8x1xf32>
      %cst_56 = arith.constant 3.200000e+01 : f32
      %94 = vector.broadcast %cst_56 : f32 to vector<8x1xf32>
      %95 = arith.divf %93, %94 : vector<8x1xf32>
      %96 = vector.broadcast %88 : vector<8x1xf32> to vector<8x32xf32>
      %97 = arith.subf %82, %96 : vector<8x32xf32>
      %cst_57 = arith.constant 9.99999974E-6 : f32
      %98 = vector.broadcast %cst_57 : f32 to vector<8x1xf32>
      %99 = arith.addf %95, %98 : vector<8x1xf32>
      %100 = math.rsqrt %99 : vector<8x1xf32>
      %101 = vector.broadcast %100 : vector<8x1xf32> to vector<8x32xf32>
      %102 = arith.mulf %97, %101 : vector<8x32xf32>
      %103 = vector.broadcast %83 : vector<1x32xf32> to vector<8x32xf32>
      %104 = arith.mulf %102, %103 : vector<8x32xf32>
      %105 = vector.broadcast %84 : vector<1x32xf32> to vector<8x32xf32>
      %106 = arith.addf %104, %105 : vector<8x32xf32>
      %c0_58 = arith.constant 0 : index
      %c0_59 = arith.constant 0 : index
      %107 = vector.load %arg5[%c0_58, %c0_59] : memref<32x96xf32, #tpu.memory_space<vmem>>, vector<32x96xf32>
      %cst_60 = arith.constant dense<0.000000e+00> : vector<8x96xf32>
      %108 = tpu.matmul %106, %107, %cst_60 {dimension_numbers = #tpu.dot_dimension_numbers<[1], [0], [0], [1], [0, 0, 1, 1], [], []>} : vector<8x32xf32>, vector<32x96xf32>, vector<8x96xf32> -> vector<8x96xf32>
      %c0_61 = arith.constant 0 : index
      %c0_62 = arith.constant 0 : index
      %109 = vector.load %arg6[%c0_61, %c0_62] : memref<1x96xf32, #tpu.memory_space<vmem>>, vector<1x96xf32>
      %110 = vector.broadcast %109 : vector<1x96xf32> to vector<8x96xf32>
      %111 = arith.addf %108, %110 : vector<8x96xf32>
      %112 = vector.extract_strided_slice %111 {offsets = [0, 0], sizes = [8, 32], strides = [1, 1]} : vector<8x96xf32> to vector<8x32xf32>
      %113 = vector.broadcast %cst : f32 to vector<8x32xf32>
      %114 = arith.mulf %112, %113 : vector<8x32xf32>
      %115 = vector.extract_strided_slice %111 {offsets = [0, 32], sizes = [8, 32], strides = [1, 1]} : vector<8x96xf32> to vector<8x32xf32>
      %116 = vector.extract_strided_slice %111 {offsets = [0, 64], sizes = [8, 32], strides = [1, 1]} : vector<8x96xf32> to vector<8x32xf32>
      %117 = vector.extract_strided_slice %114 {offsets = [0, 0], sizes = [8, 8], strides = [1, 1]} : vector<8x32xf32> to vector<8x8xf32>
      %c0_63 = arith.constant 0 : index
      %c0_64 = arith.constant 0 : index
      %c0_65 = arith.constant 0 : index
      %118 = vector.load %arg16[%c0_63, %c0_64, %c0_65] : memref<4x8x8xf32, #tpu.memory_space<vmem>>, vector<1x8x8xf32>
      %119 = vector.shape_cast %118 : vector<1x8x8xf32> to vector<8x8xf32>
      %120 = vector.shape_cast %117 : vector<8x8xf32> to vector<1x8x8xf32>
      tpu.vector_store %arg16[%c0_63, %c0_64, %c0_65], %120 {strides = array<i32>} : memref<4x8x8xf32, #tpu.memory_space<vmem>>, vector<1x8x8xf32>,
      %121 = vector.extract_strided_slice %115 {offsets = [0, 0], sizes = [8, 8], strides = [1, 1]} : vector<8x32xf32> to vector<8x8xf32>
      %c0_66 = arith.constant 0 : index
      %c0_67 = arith.constant 0 : index
      %c0_68 = arith.constant 0 : index
      %122 = vector.load %arg17[%c0_66, %c0_67, %c0_68] : memref<4x8x8xf32, #tpu.memory_space<vmem>>, vector<1x8x8xf32>
      %123 = vector.shape_cast %122 : vector<1x8x8xf32> to vector<8x8xf32>
      %124 = vector.shape_cast %121 : vector<8x8xf32> to vector<1x8x8xf32>
      tpu.vector_store %arg17[%c0_66, %c0_67, %c0_68], %124 {strides = array<i32>} : memref<4x8x8xf32, #tpu.memory_space<vmem>>, vector<1x8x8xf32>,
      %125 = vector.extract_strided_slice %116 {offsets = [0, 0], sizes = [8, 8], strides = [1, 1]} : vector<8x32xf32> to vector<8x8xf32>
      %c0_69 = arith.constant 0 : index
      %c0_70 = arith.constant 0 : index
      %c0_71 = arith.constant 0 : index
      %126 = vector.load %arg18[%c0_69, %c0_70, %c0_71] : memref<4x8x8xf32, #tpu.memory_space<vmem>>, vector<1x8x8xf32>
      %127 = vector.shape_cast %126 : vector<1x8x8xf32> to vector<8x8xf32>
      %128 = vector.shape_cast %125 : vector<8x8xf32> to vector<1x8x8xf32>
      tpu.vector_store %arg18[%c0_69, %c0_70, %c0_71], %128 {strides = array<i32>} : memref<4x8x8xf32, #tpu.memory_space<vmem>>, vector<1x8x8xf32>,
      %129 = vector.extract_strided_slice %114 {offsets = [0, 8], sizes = [8, 8], strides = [1, 1]} : vector<8x32xf32> to vector<8x8xf32>
      %c1 = arith.constant 1 : index
      %c0_72 = arith.constant 0 : index
      %c0_73 = arith.constant 0 : index
      %130 = vector.load %arg16[%c1, %c0_72, %c0_73] : memref<4x8x8xf32, #tpu.memory_space<vmem>>, vector<1x8x8xf32>
      %131 = vector.shape_cast %130 : vector<1x8x8xf32> to vector<8x8xf32>
      %132 = vector.shape_cast %129 : vector<8x8xf32> to vector<1x8x8xf32>
      tpu.vector_store %arg16[%c1, %c0_72, %c0_73], %132 {strides = array<i32>} : memref<4x8x8xf32, #tpu.memory_space<vmem>>, vector<1x8x8xf32>,
      %133 = vector.extract_strided_slice %115 {offsets = [0, 8], sizes = [8, 8], strides = [1, 1]} : vector<8x32xf32> to vector<8x8xf32>
      %c1_74 = arith.constant 1 : index
      %c0_75 = arith.constant 0 : index
      %c0_76 = arith.constant 0 : index
      %134 = vector.load %arg17[%c1_74, %c0_75, %c0_76] : memref<4x8x8xf32, #tpu.memory_space<vmem>>, vector<1x8x8xf32>
      %135 = vector.shape_cast %134 : vector<1x8x8xf32> to vector<8x8xf32>
      %136 = vector.shape_cast %133 : vector<8x8xf32> to vector<1x8x8xf32>
      tpu.vector_store %arg17[%c1_74, %c0_75, %c0_76], %136 {strides = array<i32>} : memref<4x8x8xf32, #tpu.memory_space<vmem>>, vector<1x8x8xf32>,
      %137 = vector.extract_strided_slice %116 {offsets = [0, 8], sizes = [8, 8], strides = [1, 1]} : vector<8x32xf32> to vector<8x8xf32>
      %c1_77 = arith.constant 1 : index
      %c0_78 = arith.constant 0 : index
      %c0_79 = arith.constant 0 : index
      %138 = vector.load %arg18[%c1_77, %c0_78, %c0_79] : memref<4x8x8xf32, #tpu.memory_space<vmem>>, vector<1x8x8xf32>
      %139 = vector.shape_cast %138 : vector<1x8x8xf32> to vector<8x8xf32>
      %140 = vector.shape_cast %137 : vector<8x8xf32> to vector<1x8x8xf32>
      tpu.vector_store %arg18[%c1_77, %c0_78, %c0_79], %140 {strides = array<i32>} : memref<4x8x8xf32, #tpu.memory_space<vmem>>, vector<1x8x8xf32>,
      %141 = vector.extract_strided_slice %114 {offsets = [0, 16], sizes = [8, 8], strides = [1, 1]} : vector<8x32xf32> to vector<8x8xf32>
      %c2 = arith.constant 2 : index
      %c0_80 = arith.constant 0 : index
      %c0_81 = arith.constant 0 : index
      %142 = vector.load %arg16[%c2, %c0_80, %c0_81] : memref<4x8x8xf32, #tpu.memory_space<vmem>>, vector<1x8x8xf32>
      %143 = vector.shape_cast %142 : vector<1x8x8xf32> to vector<8x8xf32>
      %144 = vector.shape_cast %141 : vector<8x8xf32> to vector<1x8x8xf32>
      tpu.vector_store %arg16[%c2, %c0_80, %c0_81], %144 {strides = array<i32>} : memref<4x8x8xf32, #tpu.memory_space<vmem>>, vector<1x8x8xf32>,
      %145 = vector.extract_strided_slice %115 {offsets = [0, 16], sizes = [8, 8], strides = [1, 1]} : vector<8x32xf32> to vector<8x8xf32>
      %c2_82 = arith.constant 2 : index
      %c0_83 = arith.constant 0 : index
      %c0_84 = arith.constant 0 : index
      %146 = vector.load %arg17[%c2_82, %c0_83, %c0_84] : memref<4x8x8xf32, #tpu.memory_space<vmem>>, vector<1x8x8xf32>
      %147 = vector.shape_cast %146 : vector<1x8x8xf32> to vector<8x8xf32>
      %148 = vector.shape_cast %145 : vector<8x8xf32> to vector<1x8x8xf32>
      tpu.vector_store %arg17[%c2_82, %c0_83, %c0_84], %148 {strides = array<i32>} : memref<4x8x8xf32, #tpu.memory_space<vmem>>, vector<1x8x8xf32>,
      %149 = vector.extract_strided_slice %116 {offsets = [0, 16], sizes = [8, 8], strides = [1, 1]} : vector<8x32xf32> to vector<8x8xf32>
      %c2_85 = arith.constant 2 : index
      %c0_86 = arith.constant 0 : index
      %c0_87 = arith.constant 0 : index
      %150 = vector.load %arg18[%c2_85, %c0_86, %c0_87] : memref<4x8x8xf32, #tpu.memory_space<vmem>>, vector<1x8x8xf32>
      %151 = vector.shape_cast %150 : vector<1x8x8xf32> to vector<8x8xf32>
      %152 = vector.shape_cast %149 : vector<8x8xf32> to vector<1x8x8xf32>
      tpu.vector_store %arg18[%c2_85, %c0_86, %c0_87], %152 {strides = array<i32>} : memref<4x8x8xf32, #tpu.memory_space<vmem>>, vector<1x8x8xf32>,
      %153 = vector.extract_strided_slice %114 {offsets = [0, 24], sizes = [8, 8], strides = [1, 1]} : vector<8x32xf32> to vector<8x8xf32>
      %c3 = arith.constant 3 : index
      %c0_88 = arith.constant 0 : index
      %c0_89 = arith.constant 0 : index
      %154 = vector.load %arg16[%c3, %c0_88, %c0_89] : memref<4x8x8xf32, #tpu.memory_space<vmem>>, vector<1x8x8xf32>
      %155 = vector.shape_cast %154 : vector<1x8x8xf32> to vector<8x8xf32>
      %156 = vector.shape_cast %153 : vector<8x8xf32> to vector<1x8x8xf32>
      tpu.vector_store %arg16[%c3, %c0_88, %c0_89], %156 {strides = array<i32>} : memref<4x8x8xf32, #tpu.memory_space<vmem>>, vector<1x8x8xf32>,
      %157 = vector.extract_strided_slice %115 {offsets = [0, 24], sizes = [8, 8], strides = [1, 1]} : vector<8x32xf32> to vector<8x8xf32>
      %c3_90 = arith.constant 3 : index
      %c0_91 = arith.constant 0 : index
      %c0_92 = arith.constant 0 : index
      %158 = vector.load %arg17[%c3_90, %c0_91, %c0_92] : memref<4x8x8xf32, #tpu.memory_space<vmem>>, vector<1x8x8xf32>
      %159 = vector.shape_cast %158 : vector<1x8x8xf32> to vector<8x8xf32>
      %160 = vector.shape_cast %157 : vector<8x8xf32> to vector<1x8x8xf32>
      tpu.vector_store %arg17[%c3_90, %c0_91, %c0_92], %160 {strides = array<i32>} : memref<4x8x8xf32, #tpu.memory_space<vmem>>, vector<1x8x8xf32>,
      %161 = vector.extract_strided_slice %116 {offsets = [0, 24], sizes = [8, 8], strides = [1, 1]} : vector<8x32xf32> to vector<8x8xf32>
      %c3_93 = arith.constant 3 : index
      %c0_94 = arith.constant 0 : index
      %c0_95 = arith.constant 0 : index
      %162 = vector.load %arg18[%c3_93, %c0_94, %c0_95] : memref<4x8x8xf32, #tpu.memory_space<vmem>>, vector<1x8x8xf32>
      %163 = vector.shape_cast %162 : vector<1x8x8xf32> to vector<8x8xf32>
      %164 = vector.shape_cast %161 : vector<8x8xf32> to vector<1x8x8xf32>
      tpu.vector_store %arg18[%c3_93, %c0_94, %c0_95], %164 {strides = array<i32>} : memref<4x8x8xf32, #tpu.memory_space<vmem>>, vector<1x8x8xf32>,
    } else {
    }
    %c0 = arith.constant 0 : index
    %c0_1 = arith.constant 0 : index
    %c0_2 = arith.constant 0 : index
    %3 = vector.load %arg2[%c0, %c0_1, %c0_2] : memref<1x8x32xf32, #tpu.memory_space<vmem>>, vector<1x8x32xf32>
    %4 = vector.shape_cast %3 : vector<1x8x32xf32> to vector<8x32xf32>
    %c0_3 = arith.constant 0 : index
    %c0_4 = arith.constant 0 : index
    %c0_5 = arith.constant 0 : index
    %5 = vector.load %arg16[%c0_3, %c0_4, %c0_5] : memref<4x8x8xf32, #tpu.memory_space<vmem>>, vector<4x8x8xf32>
    %c0_6 = arith.constant 0 : index
    %c0_7 = arith.constant 0 : index
    %c0_8 = arith.constant 0 : index
    %6 = vector.load %arg17[%c0_6, %c0_7, %c0_8] : memref<4x8x8xf32, #tpu.memory_space<vmem>>, vector<4x8x8xf32>
    "tpu.trace_start"() <{level = 10 : i32, message = "hqd,hkd->hqk"}> : () -> ()
    %cst_9 = arith.constant dense<0.000000e+00> : vector<4x8x8xf32>
    %7 = tpu.matmul %5, %6, %cst_9 {dimension_numbers = #tpu.dot_dimension_numbers<[2], [2], [1], [1], [0, 0, 0, 1, 1, 1], [0], [0]>} : vector<4x8x8xf32>, vector<4x8x8xf32>, vector<4x8x8xf32> -> vector<4x8x8xf32>
    "tpu.trace_stop"() : () -> ()
    %cst_10 = arith.constant dense<0xFF800000> : vector<4x8xf32>
    %8 = vector.multi_reduction <maximumf>, %7, %cst_10 [2] : vector<4x8x8xf32> to vector<4x8xf32>
    %9 = vector.shape_cast %8 : vector<4x8xf32> to vector<4x8x1xf32>
    %10 = vector.broadcast %9 : vector<4x8x1xf32> to vector<4x8x8xf32>
    %11 = arith.subf %7, %10 : vector<4x8x8xf32>
    %12 = math.exp %11 : vector<4x8x8xf32>
    %cst_11 = arith.constant dense<0.000000e+00> : vector<4x8xf32>
    %13 = vector.multi_reduction <add>, %12, %cst_11 [2] : vector<4x8x8xf32> to vector<4x8xf32>
    %14 = vector.shape_cast %13 : vector<4x8xf32> to vector<4x8x1xf32>
    %15 = tpu.reciprocal %14 {approx = true} : vector<4x8x1xf32> -> vector<4x8x1xf32>
    %16 = vector.broadcast %15 : vector<4x8x1xf32> to vector<4x8x8xf32>
    %17 = arith.mulf %12, %16 : vector<4x8x8xf32>
    %c0_12 = arith.constant 0 : index
    %c0_13 = arith.constant 0 : index
    %c0_14 = arith.constant 0 : index
    %18 = vector.load %arg18[%c0_12, %c0_13, %c0_14] : memref<4x8x8xf32, #tpu.memory_space<vmem>>, vector<4x8x8xf32>
    "tpu.trace_start"() <{level = 10 : i32, message = "hqk,hkd->hqd"}> : () -> ()
    %cst_15 = arith.constant dense<0.000000e+00> : vector<4x8x8xf32>
    %19 = tpu.matmul %17, %18, %cst_15 {dimension_numbers = #tpu.dot_dimension_numbers<[2], [1], [1], [2], [0, 0, 0, 1, 1, 2], [0], [0]>} : vector<4x8x8xf32>, vector<4x8x8xf32>, vector<4x8x8xf32> -> vector<4x8x8xf32>
    "tpu.trace_stop"() : () -> ()
    %20 = vector.extract_strided_slice %19 {offsets = [0, 0, 0], sizes = [1, 8, 8], strides = [1, 1, 1]} : vector<4x8x8xf32> to vector<1x8x8xf32>
    %21 = vector.shape_cast %20 : vector<1x8x8xf32> to vector<8x8xf32>
    %22 = vector.extract_strided_slice %19 {offsets = [1, 0, 0], sizes = [1, 8, 8], strides = [1, 1, 1]} : vector<4x8x8xf32> to vector<1x8x8xf32>
    %23 = vector.shape_cast %22 : vector<1x8x8xf32> to vector<8x8xf32>
    %24 = vector.extract_strided_slice %19 {offsets = [2, 0, 0], sizes = [1, 8, 8], strides = [1, 1, 1]} : vector<4x8x8xf32> to vector<1x8x8xf32>
    %25 = vector.shape_cast %24 : vector<1x8x8xf32> to vector<8x8xf32>
    %26 = vector.extract_strided_slice %19 {offsets = [3, 0, 0], sizes = [1, 8, 8], strides = [1, 1, 1]} : vector<4x8x8xf32> to vector<1x8x8xf32>
    %27 = vector.shape_cast %26 : vector<1x8x8xf32> to vector<8x8xf32>
    %28 = tpu.concatenate %21, %23, %25, %27 in 1 : vector<8x8xf32>, vector<8x8xf32>, vector<8x8xf32>, vector<8x8xf32> -> vector<8x32xf32>
    %c0_16 = arith.constant 0 : index
    %c0_17 = arith.constant 0 : index
    %29 = vector.load %arg7[%c0_16, %c0_17] : memref<32x32xf32, #tpu.memory_space<vmem>>, vector<32x32xf32>
    %cst_18 = arith.constant dense<0.000000e+00> : vector<8x32xf32>
    %30 = tpu.matmul %28, %29, %cst_18 {dimension_numbers = #tpu.dot_dimension_numbers<[1], [0], [0], [1], [0, 0, 1, 1], [], []>} : vector<8x32xf32>, vector<32x32xf32>, vector<8x32xf32> -> vector<8x32xf32>
    %c0_19 = arith.constant 0 : index
    %c0_20 = arith.constant 0 : index
    %31 = vector.load %arg8[%c0_19, %c0_20] : memref<1x32xf32, #tpu.memory_space<vmem>>, vector<1x32xf32>
    %32 = vector.broadcast %31 : vector<1x32xf32> to vector<8x32xf32>
    %33 = arith.addf %30, %32 : vector<8x32xf32>
    %34 = arith.addf %4, %33 : vector<8x32xf32>
    %c0_21 = arith.constant 0 : index
    %c0_22 = arith.constant 0 : index
    %35 = vector.load %arg9[%c0_21, %c0_22] : memref<1x32xf32, #tpu.memory_space<vmem>>, vector<1x32xf32>
    %c0_23 = arith.constant 0 : index
    %c0_24 = arith.constant 0 : index
    %36 = vector.load %arg10[%c0_23, %c0_24] : memref<1x32xf32, #tpu.memory_space<vmem>>, vector<1x32xf32>
    %cst_25 = arith.constant dense<0.000000e+00> : vector<8xf32>
    %37 = vector.multi_reduction <add>, %34, %cst_25 [1] : vector<8x32xf32> to vector<8xf32>
    %38 = vector.shape_cast %37 : vector<8xf32> to vector<8x1xf32>
    %cst_26 = arith.constant 3.200000e+01 : f32
    %39 = vector.broadcast %cst_26 : f32 to vector<8x1xf32>
    %40 = arith.divf %38, %39 : vector<8x1xf32>
    %41 = vector.broadcast %40 : vector<8x1xf32> to vector<8x32xf32>
    %42 = arith.subf %34, %41 : vector<8x32xf32>
    %43 = arith.mulf %42, %42 : vector<8x32xf32>
    %cst_27 = arith.constant dense<0.000000e+00> : vector<8xf32>
    %44 = vector.multi_reduction <add>, %43, %cst_27 [1] : vector<8x32xf32> to vector<8xf32>
    %45 = vector.shape_cast %44 : vector<8xf32> to vector<8x1xf32>
    %cst_28 = arith.constant 3.200000e+01 : f32
    %46 = vector.broadcast %cst_28 : f32 to vector<8x1xf32>
    %47 = arith.divf %45, %46 : vector<8x1xf32>
    %48 = vector.broadcast %40 : vector<8x1xf32> to vector<8x32xf32>
    %49 = arith.subf %34, %48 : vector<8x32xf32>
    %cst_29 = arith.constant 9.99999974E-6 : f32
    %50 = vector.broadcast %cst_29 : f32 to vector<8x1xf32>
    %51 = arith.addf %47, %50 : vector<8x1xf32>
    %52 = math.rsqrt %51 : vector<8x1xf32>
    %53 = vector.broadcast %52 : vector<8x1xf32> to vector<8x32xf32>
    %54 = arith.mulf %49, %53 : vector<8x32xf32>
    %55 = vector.broadcast %35 : vector<1x32xf32> to vector<8x32xf32>
    %56 = arith.mulf %54, %55 : vector<8x32xf32>
    %57 = vector.broadcast %36 : vector<1x32xf32> to vector<8x32xf32>
    %58 = arith.addf %56, %57 : vector<8x32xf32>
    %c0_30 = arith.constant 0 : index
    %c0_31 = arith.constant 0 : index
    %59 = vector.load %arg11[%c0_30, %c0_31] : memref<32x128xf32, #tpu.memory_space<vmem>>, vector<32x128xf32>
    %cst_32 = arith.constant dense<0.000000e+00> : vector<8x128xf32>
    %60 = tpu.matmul %58, %59, %cst_32 {dimension_numbers = #tpu.dot_dimension_numbers<[1], [0], [0], [1], [0, 0, 1, 1], [], []>} : vector<8x32xf32>, vector<32x128xf32>, vector<8x128xf32> -> vector<8x128xf32>
    %c0_33 = arith.constant 0 : index
    %c0_34 = arith.constant 0 : index
    %61 = vector.load %arg12[%c0_33, %c0_34] : memref<1x128xf32, #tpu.memory_space<vmem>>, vector<1x128xf32>
    %62 = vector.broadcast %61 : vector<1x128xf32> to vector<8x128xf32>
    %63 = arith.addf %60, %62 : vector<8x128xf32>
    %cst_35 = arith.constant 5.000000e-01 : f32
    %64 = vector.broadcast %cst_35 : f32 to vector<8x128xf32>
    %65 = arith.mulf %64, %63 : vector<8x128xf32>
    %cst_36 = arith.constant 0.707106769 : f32
    %66 = vector.broadcast %cst_36 : f32 to vector<8x128xf32>
    %67 = arith.mulf %63, %66 : vector<8x128xf32>
    %68 = math.erf %67 : vector<8x128xf32>
    %cst_37 = arith.constant 1.000000e+00 : f32
    %69 = vector.broadcast %cst_37 : f32 to vector<8x128xf32>
    %70 = arith.addf %69, %68 : vector<8x128xf32>
    %71 = arith.mulf %65, %70 : vector<8x128xf32>
    %c0_38 = arith.constant 0 : index
    %c0_39 = arith.constant 0 : index
    %72 = vector.load %arg13[%c0_38, %c0_39] : memref<128x32xf32, #tpu.memory_space<vmem>>, vector<128x32xf32>
    %cst_40 = arith.constant dense<0.000000e+00> : vector<8x32xf32>
    %73 = tpu.matmul %71, %72, %cst_40 {dimension_numbers = #tpu.dot_dimension_numbers<[1], [0], [0], [1], [0, 0, 1, 1], [], []>} : vector<8x128xf32>, vector<128x32xf32>, vector<8x32xf32> -> vector<8x32xf32>
    %c0_41 = arith.constant 0 : index
    %c0_42 = arith.constant 0 : index
    %74 = vector.load %arg14[%c0_41, %c0_42] : memref<1x32xf32, #tpu.memory_space<vmem>>, vector<1x32xf32>
    %75 = vector.broadcast %74 : vector<1x32xf32> to vector<8x32xf32>
    %76 = arith.addf %73, %75 : vector<8x32xf32>
    %77 = arith.addf %34, %76 : vector<8x32xf32>
    %c0_43 = arith.constant 0 : index
    %c0_44 = arith.constant 0 : index
    %c0_45 = arith.constant 0 : index
    %78 = vector.load %arg15[%c0_43, %c0_44, %c0_45] : memref<1x8x32xf32, #tpu.memory_space<vmem>>, vector<1x8x32xf32>
    %79 = vector.shape_cast %78 : vector<1x8x32xf32> to vector<8x32xf32>
    %80 = vector.shape_cast %77 : vector<8x32xf32> to vector<1x8x32xf32>
    tpu.vector_store %arg15[%c0_43, %c0_44, %c0_45], %80 {strides = array<i32>} : memref<1x8x32xf32, #tpu.memory_space<vmem>>, vector<1x8x32xf32>,
    return
  }
  func.func @transform_0(%arg0: i32, %arg1: i32) -> (i32, i32, i32) {
    %c0_i32 = arith.constant 0 : i32
    %c0_i32_0 = arith.constant 0 : i32
    %c0_i32_1 = arith.constant 0 : i32
    return %arg0, %c0_i32, %c0_i32_0 : i32, i32, i32
  }
  func.func @transform_1(%arg0: i32, %arg1: i32) -> (i32, i32) {
    %c0_i32 = arith.constant 0 : i32
    %c0_i32_0 = arith.constant 0 : i32
    %c0_i32_1 = arith.constant 0 : i32
    return %c0_i32, %c0_i32_0 : i32, i32
  }
  func.func @transform_2(%arg0: i32, %arg1: i32) -> (i32, i32) {
    %c0_i32 = arith.constant 0 : i32
    %c0_i32_0 = arith.constant 0 : i32
    %c0_i32_1 = arith.constant 0 : i32
    return %c0_i32, %c0_i32_0 : i32, i32
  }
  func.func @transform_3(%arg0: i32, %arg1: i32) -> (i32, i32) {
    %c0_i32 = arith.constant 0 : i32
    %c0_i32_0 = arith.constant 0 : i32
    %c0_i32_1 = arith.constant 0 : i32
    return %c0_i32, %c0_i32_0 : i32, i32
  }
  func.func @transform_4(%arg0: i32, %arg1: i32) -> (i32, i32) {
    %c0_i32 = arith.constant 0 : i32
    %c0_i32_0 = arith.constant 0 : i32
    %c0_i32_1 = arith.constant 0 : i32
    return %c0_i32, %c0_i32_0 : i32, i32
  }
  func.func @transform_5(%arg0: i32, %arg1: i32) -> (i32, i32) {
    %c0_i32 = arith.constant 0 : i32
    %c0_i32_0 = arith.constant 0 : i32
    %c0_i32_1 = arith.constant 0 : i32
    return %c0_i32, %c0_i32_0 : i32, i32
  }
  func.func @transform_6(%arg0: i32, %arg1: i32) -> (i32, i32) {
    %c0_i32 = arith.constant 0 : i32
    %c0_i32_0 = arith.constant 0 : i32
    %c0_i32_1 = arith.constant 0 : i32
    return %c0_i32, %c0_i32_0 : i32, i32
  }
  func.func @transform_7(%arg0: i32, %arg1: i32) -> (i32, i32) {
    %c0_i32 = arith.constant 0 : i32
    %c0_i32_0 = arith.constant 0 : i32
    %c0_i32_1 = arith.constant 0 : i32
    return %c0_i32, %c0_i32_0 : i32, i32
  }
  func.func @transform_8(%arg0: i32, %arg1: i32) -> (i32, i32) {
    %c0_i32 = arith.constant 0 : i32
    %c0_i32_0 = arith.constant 0 : i32
    %c0_i32_1 = arith.constant 0 : i32
    return %c0_i32, %c0_i32_0 : i32, i32
  }
  func.func @transform_9(%arg0: i32, %arg1: i32) -> (i32, i32) {
    %c0_i32 = arith.constant 0 : i32
    %c0_i32_0 = arith.constant 0 : i32
    %c0_i32_1 = arith.constant 0 : i32
    return %c0_i32, %c0_i32_0 : i32, i32
  }
  func.func @transform_10(%arg0: i32, %arg1: i32) -> (i32, i32) {
    %c0_i32 = arith.constant 0 : i32
    %c0_i32_0 = arith.constant 0 : i32
    %c0_i32_1 = arith.constant 0 : i32
    return %c0_i32, %c0_i32_0 : i32, i32
  }
  func.func @transform_11(%arg0: i32, %arg1: i32) -> (i32, i32) {
    %c0_i32 = arith.constant 0 : i32
    %c0_i32_0 = arith.constant 0 : i32
    %c0_i32_1 = arith.constant 0 : i32
    return %c0_i32, %c0_i32_0 : i32, i32
  }
  func.func @transform_12(%arg0: i32, %arg1: i32) -> (i32, i32) {
    %c0_i32 = arith.constant 0 : i32
    %c0_i32_0 = arith.constant 0 : i32
    %c0_i32_1 = arith.constant 0 : i32
    return %c0_i32, %c0_i32_0 : i32, i32
  }
  func.func @transform_13(%arg0: i32, %arg1: i32) -> (i32, i32, i32) {
    %c0_i32 = arith.constant 0 : i32
    %c0_i32_0 = arith.constant 0 : i32
    return %arg0, %arg1, %c0_i32 : i32, i32, i32
  }
}

</mosaic_0001>

<bundles_post_ra>
// kernel: tpu_custom_call.1
= control target key start
LH: loop header
LB: loop body
LE: loop exit
PB: predicated region body
PF: predicated region fallthrough
CT: control target
= control target key end

     0   :  { %s2459_s0 = inlined_call_operand.vmem [shape: f32[2,8,32], index: 0, kind: input, shape index: {}]   ;;  %s2460_s1 = inlined_call_operand.vmem [shape: f32[1,32], index: 1, kind: input, shape index: {}]   ;;  %s2461_s2 = inlined_call_operand.vmem [shape: f32[1,32], index: 2, kind: input, shape index: {}]   ;;  %s2462_s3 = inlined_call_operand.vmem [shape: f32[32,96], index: 3, kind: input, shape index: {}]   ;;  %s2463_s4 = inlined_call_operand.vmem [shape: f32[1,96], index: 4, kind: input, shape index: {}]   ;;  %s2464_s5 = inlined_call_operand.vmem [shape: f32[32,32], index: 5, kind: input, shape index: {}]   ;;  %s2465_s6 = inlined_call_operand.vmem [shape: f32[1,32], index: 6, kind: input, shape index: {}]   ;;  %s2466_s7 = inlined_call_operand.vmem [shape: f32[1,32], index: 7, kind: input, shape index: {}]   ;;  %s2467_s8 = inlined_call_operand.vmem [shape: f32[1,32], index: 8, kind: input, shape index: {}]   ;;  %s2468_s9 = inlined_call_operand.vmem [shape: f32[32,128], index: 9, kind: input, shape index: {}]   ;;  %s2469_s10 = inlined_call_operand.vmem [shape: f32[1,128], index: 10, kind: input, shape index: {}]   ;;  %s2470_s11 = inlined_call_operand.vmem [shape: f32[128,32], index: 11, kind: input, shape index: {}]   ;;  %s2471_s12 = inlined_call_operand.vmem [shape: f32[1,32], index: 12, kind: input, shape index: {}]   ;;  %s2472_s13 = inlined_call_operand.hbm [shape: f32[2,8,32], index: 13, kind: output, shape index: {}]  }
   0x1   :  { %2473 = sst [smem:[#allocation8_spill]] %s2459_s0 }
   0x2   :  { %2474 = sst [smem:[#allocation9_spill]] %s2460_s1 }
   0x3   :  { %2475 = sst [smem:[#allocation10_spill]] %s2461_s2 }
   0x4   :  { %2476 = sst [smem:[#allocation11_spill]] %s2462_s3 }
   0x5   :  { %2477 = sst [smem:[#allocation12_spill]] %s2463_s4 }
   0x6   :  { %18 = vsyncpa [#allocation6], 0 }
   0x7   :  { %20 = vsyncpa [#allocation6 + $0x1], 0  ;;  %s2130_s25 = smov 0   ;;  %s2132_s26 = smov 0  }
   0x8   :  { %s2134_s27 = smov 0   ;;  %s2136_s28 = smov 0  }
   0x9   :  { %s2138_s29 = smov 0   ;;  %s2140_s30 = smov 0  }
   0xa LB: > { %s1682_s14 = sadd.s32 4294967295, %s2041_s30   ;;  %s1683_s15 = sadd.s32 4294967294, %s2041_s30   ;;  %s2041_s30 = sphi %s2140_s30, %s26_s30   ;;  %s2037_s29 = sphi %s2138_s29, %s2489_s29   ;;  %s2033_s28 = sphi %s2136_s28, %s2488_s28   ;;  %s2029_s27 = sphi %s2134_s27, %s2487_s27   ;;  %s2025_s26 = sphi %s2132_s26, %s2486_s26   ;;  %s2021_s25 = sphi %s2130_s25, %s2485_s25  }
   0xb   : > { %s38_s16 = sadd.s32 1, %s2037_s29  ;;  %s325_s17 = sadd.s32 1, %s2029_s27 }
   0xc   : > { %p40_p0 = scmp.ge.s32.totalorder %s38_s16, 2  ;;  %p335_p1 = scmp.ne.s32.totalorder %s2029_s27, %s2025_s26 }
   0xd   : > { %p336_p2 = scmp.eq.s32.totalorder %s1682_s14, 1  ;;  %p341_p3 = scmp.ne.s32.totalorder %s2025_s26, %s2021_s25 }
   0xe   : > { %s2491_s16 = smov (%p40_p0, %s38_s16), 0  ;;  %p342_p5 = scmp.eq.s32.totalorder %s1683_s15, 1 }
   0xf   : > { %p2170_p4 = por %p336_p2, %p335_p1  ;;  %s320_s19 = ssub.s32 %s2037_s29, %s2491_s16 }
  0x10   : > { %p1686_p6 = scmp.ge.s32.totalorder %s2041_s30, 1  ;;  %p323_p7 = scmp.eq.s32.totalorder %s320_s19, 0 }
  0x11   : > { %p2177_p8 = por %p342_p5, %p341_p3  ;;  %p403_p9 = scmp.lt.s32.totalorder %s2041_s30, 3 }
  0x12   : > { %s2183_s21 = scalar_select %p323_p7, %s2029_s27, %s325_s17  }
  0x13   : > { %p404_p10 = pnand %p1686_p6, %p403_p9 }
  0x14   : > { %p446_p11 = scmp.lt.s32.totalorder (!%p404_p10), %s2033_s28, 1  ;;  %s2480_s0 = sld [smem:[#allocation8_spill]] (!%p404_p10) }
  0x15   : > { %407 = sbr.rel (%p404_p10) target bundleno = 2422 (0x976), region = 72  ;;  %s2481_s3 = sld [smem:[#allocation11_spill]] (!%p404_p10) }
  0x16   : > { %s2482_s1 = sld [smem:[#allocation9_spill]] (!%p404_p10)  ;;  %s2045_s17 = smov (!%p404_p10), 96  }
  0x17   : > { %s2483_s2 = sld [smem:[#allocation10_spill]] (!%p404_p10)  ;;  %s2046_s19 = smov (!%p404_p10), 120  }
  0x18   : > { %s2484_s4 = sld [smem:[#allocation12_spill]] (!%p404_p10)  ;;  %s2049_s24 = smov (!%p404_p10), 72  }
  0x19   : > { %s2050_s14 = smov (!%p404_p10), 112  }
  0x1a   : > { %s447_s22 = scalar_select %p446_p11, %s2033_s28, 1  ;;  %vm457_vm0 = vcmask 261120   ;;  %v2043_v8 = vmov 0.0   ;;  %vm2044_vm1 = vmmov 0   ;;  %vm571_vm2 = vcmask 64512  }
  0x1b   : > { %v489_v7 = vld [vmem:[%s2481_s3 + $0x18] sm:$0xff]  ;;  %1764 = vmatprep.subr.mxu1 %v2043_v8  ;;  %v488_v9 = vld [vmem:[%s2481_s3 + $0x10] sm:$0xff]  ;;  %1772 = vmatprep.mubr.msk.f32.mxu1 %vm2044_vm1, %v2043_v8  ;;  %v487_v10 = vld [vmem:[%s2481_s3 + $0x8] sm:$0xff]  ;;  %vm1295_vm3 = vcmask 130048   ;;  %vm1297_vm4 = vcmask 195584  }
  0x1c   : > { %s1688_s23 = sshll.u32 %s447_s22, 3  ;;  %1765 = vmatpush3.msra.mxu1 %v489_v7  ;;  %1785 = vmatprep.subr.mxu0 %v2043_v8  ;;  %v486_v11 = vld [vmem:[%s2481_s3] sm:$0xff]  ;;  %s2047_s22 = smov 88  }
  0x1d   : > { %s449_s15 = scalar_lea.vmem %s2480_s0, %s1688_s23  ;;  %1766 = vmatprep.subr.mxu1 %v2043_v8  ;;  %1787 = vmatprep.mubr.msk.f32.mxu0 %vm2044_vm1, %v2043_v8  ;;  %v1689_v16 = vld [vmem:[%s2482_s1] ss:$0 sm:$0xff]  ;;  %s2048_s23 = smov 80  }
  0x1e   : > { %v2190_v0 = vld [vmem:[%s449_s15] sm:$0xff]  ;;  %1767 = vmatpush3.msra.mxu1 %v488_v9  ;;  %s2051_s15 = smov 104   ;;  %s443_s0 = sand.u32 1, %s2025_s26  }
  0x1f   : > { %v458_v1 = vsel %vm457_vm0, %v2190_v0, 0.0  ;;  %1768 = vmatprep.subr.mxu1 %v2043_v8  ;;  %v1690_v18 = vld [vmem:[%s2483_s2] ss:$0 sm:$0xff]  ;;  %s1600_s3 = scalar_lea.sflag [#allocation6], %s443_s0 }
  0x20   : > { %459 = vadd.xlane.f32.xlu0 %v458_v1  ;;  %1769 = vmatpush3.msra.mxu1 %v487_v10  ;;  %v1691_v21 = vld [vmem:[%s2484_s4] ss:$0 sm:$0xff] }
  0x21   : > { %1770 = vmatprep.subr.mxu1 %v2043_v8 }
  0x22   : > { %1771 = vmatpush3.msra.mxu1 %v486_v11 }
  0x23   : > { %1775 = vmatprep.subr.mxu1 %v2043_v8 }
  0xa9   : > { %v460_v2 = vpop.xlane.xlu0 %459 }
  0xaa   : > { %v462_v3 = vmul.f32 0.03125, %v460_v2 }
  0xac   : > { %v463_v4 = vsub.f32 %v2190_v0, %v462_v3 }
  0xae   : > { %v464_v5 = vmul.f32 %v463_v4, %v463_v4 }
  0xb0   : > { %v465_v6 = vsel %vm457_vm0, %v464_v5, 0.0 }
  0xb1   : > { %466 = vadd.xlane.f32.xlu0 %v465_v6 }
 0x13a   : > { %v467_v12 = vpop.xlane.xlu0 %466 }
 0x13b   : > { %v468_v13 = vmul.f32 0.03125, %v467_v12 }
 0x13d   : > { %v469_v14 = vadd.f32 1e-05, %v468_v13 }
 0x13f   : > { %1943 = vrsqrt.f32 %v469_v14 }
 0x14c   : > { %v1944_v15 = vpop.eup %1943 }
 0x14d   : > { %v471_v17 = vmul.f32 %v1944_v15, %v463_v4 }
 0x14f   : > { %v478_v19 = vmul.f32 %v1689_v16, %v471_v17 }
 0x151   : > { %v485_v20 = vadd.f32 %v1690_v18, %v478_v19 }
 0x153   : > { %1773 = vmatmul.mubr.msk.f32.vlgmr.msra.gmra.mxu1 %vm457_vm0, %v485_v20 }
 0x154   : > { %1777 = vmatprep.mubr.msk.f32.mxu1 %vm2044_vm1, %v2043_v8 }
 0x213   : > { %v566_v22 = vpop.f32.mrf.mxu1 }
 0x214   : > { %v2230_v23 = vadd.f32 %v1691_v21, %v566_v22 }
 0x215   : > { %v1774_v24 = vpop.f32.mrf.mxu1 }
 0x216   : > { %574 = vrot.lane.b32.xlu1 %v2230_v23, %s2045_s17  ;;  %v570_v25 = vmul.f32 0.35355338, %v2230_v23  ;;  %s2052_s17 = smov 64  }
 0x218   : > { %583 = vrot.lane.b32.xlu0 %v570_v25, %s2046_s19  ;;  %572 = vst.msk [vmem:[#allocation2] sm:$0xff] %vm571_vm2, %v570_v25  ;;  %s2053_s19 = smov 48  }
 0x21a   : > { %588 = vrot.lane.b32.xlu1 %v2230_v23, %s2047_s22  ;;  %s2054_s22 = smov 40  }
 0x21e   : > { %603 = vrot.lane.b32.xlu1 %v2230_v23, %s2048_s23  ;;  %s2055_s23 = smov 56  }
 0x21f   : > { %v629_v31 = vld [vmem:[#allocation2] sm:$0xff] }
 0x222   : > { %618 = vrot.lane.b32.xlu1 %v2230_v23, %s2049_s24 }
 0x226   : > { %598 = vrot.lane.b32.xlu1 %v570_v25, %s2050_s14  ;;  %s2056_s14 = smov 16  }
 0x22a   : > { %613 = vrot.lane.b32.xlu1 %v570_v25, %s2051_s15  ;;  %s2057_s15 = smov 8  }
 0x288   : > { %v575_v26 = vpop.permute.xlu1 %574 }
 0x289   : > { %577 = vst.msk [vmem:[#allocation3] sm:$0xff] %vm571_vm2, %v575_v26 }
 0x28a   : > { %v584_v27 = vpop.permute.xlu0 %583 }
 0x28b   : > { %587 = vst.msk [vmem:[#allocation2 + $0x8] sm:$0xff] %vm571_vm2, %v584_v27 }
 0x28c   : > { %v589_v28 = vpop.permute.xlu1 %588 }
 0x28d   : > { %592 = vst.msk [vmem:[#allocation3 + $0x8] sm:$0xff] %vm571_vm2, %v589_v28 }
 0x290   : > { %v604_v29 = vpop.permute.xlu1 %603  ;;  %v633_v30 = vld [vmem:[#allocation3] sm:$0xff] }
 0x291   : > { %607 = vst.msk [vmem:[#allocation3 + $0x10] sm:$0xff] %vm571_vm2, %v604_v29  ;;  %1776 = vmatpush3.xpose.msk.msra.mxu1 %vm571_vm2, %v633_v30 }
 0x292   : > { %1780 = vmatprep.subr.mxu1 %v2043_v8  ;;  %v630_v34 = vld [vmem:[#allocation2 + $0x8] sm:$0xff] }
 0x294   : > { %v619_v32 = vpop.permute.xlu1 %618  ;;  %1778 = vmatmul.mubr.msk.f32.vlgmr.msra.gmra.mxu1 %vm571_vm2, %v629_v31  ;;  %v634_v33 = vld [vmem:[#allocation3 + $0x8] sm:$0xff]  ;;  %v1302_v31 = vld [vmem:[%s2464_s5 + $0x18] sm:$0xff] }
 0x295   : > { %622 = vst.msk [vmem:[#allocation3 + $0x18] sm:$0xff] %vm571_vm2, %v619_v32  ;;  %1781 = vmatpush3.xpose.msk.msra.mxu1 %vm571_vm2, %v634_v33  ;;  %1782 = vmatprep.mubr.msk.f32.mxu1 %vm2044_vm1, %v2043_v8  ;;  %v1301_v33 = vld [vmem:[%s2464_s5 + $0x10] sm:$0xff] }
 0x296   : > { %1790 = vmatprep.subr.mxu1 %v2043_v8 }
 0x298   : > { %v599_v35 = vpop.permute.xlu1 %598  ;;  %1783 = vmatmul.mubr.msk.f32.vlgmr.msra.gmra.mxu1 %vm571_vm2, %v630_v34  ;;  %v635_v36 = vld [vmem:[#allocation3 + $0x10] sm:$0xff] }
 0x299   : > { %602 = vst.msk [vmem:[#allocation2 + $0x10] sm:$0xff] %vm571_vm2, %v599_v35  ;;  %1786 = vmatpush3.xpose.msk.msra.mxu0 %vm571_vm2, %v635_v36  ;;  %1792 = vmatprep.mubr.msk.f32.mxu1 %vm2044_vm1, %v2043_v8  ;;  %v1300_v35 = vld [vmem:[%s2464_s5 + $0x8] sm:$0xff]  ;;  %v1299_v36 = vld [vmem:[%s2464_s5] sm:$0xff] }
 0x29a   : > { %1795 = vmatprep.subr.mxu0 %v2043_v8 }
 0x29c   : > { %v614_v37 = vpop.permute.xlu1 %613  ;;  %v636_v38 = vld [vmem:[#allocation3 + $0x18] sm:$0xff] }
 0x29d   : > { %617 = vst.msk [vmem:[#allocation2 + $0x18] sm:$0xff] %vm571_vm2, %v614_v37  ;;  %1791 = vmatpush3.xpose.msk.msra.mxu1 %vm571_vm2, %v636_v38 }
 0x29e   : > { %1800 = vmatprep.subr.mxu1 %v2043_v8 }
 0x2a0   : > { %v631_v39 = vld [vmem:[#allocation2 + $0x10] sm:$0xff] }
 0x2a1   : > { %1788 = vmatmul.mubr.msk.f32.vlgmr.msra.gmra.mxu0 %vm571_vm2, %v631_v39 }
 0x2a2   : > { %1797 = vmatprep.mubr.msk.f32.mxu0 %vm2044_vm1, %v2043_v8 }
 0x2a4   : > { %v632_v40 = vld [vmem:[#allocation2 + $0x18] sm:$0xff] }
 0x2a5   : > { %1793 = vmatmul.mubr.msk.f32.vlgmr.msra.gmra.mxu1 %vm571_vm2, %v632_v40 }
 0x2a6   : > { %1802 = vmatprep.mubr.msk.f32.mxu1 %vm2044_vm1, %v2043_v8 }
 0x354   : > { %v710_v41 = vpop.f32.mrf.mxu1 }
 0x355   : > { %v942_v42 = vsel %vm571_vm2, %v710_v41, -inf }
 0x356   : > { %943 = vmax.xlane.f32.xlu1 %v942_v42  ;;  %v1779_v43 = vpop.f32.mrf.mxu1 }
 0x358   : > { %v786_v44 = vpop.f32.mrf.mxu1 }
 0x359   : > { %v945_v45 = vsel %vm571_vm2, %v786_v44, -inf }
 0x35a   : > { %946 = vmax.xlane.f32.xlu0 %v945_v45  ;;  %v1784_v46 = vpop.f32.mrf.mxu1 }
 0x361   : > { %v862_v47 = vpop.f32.mrf.mxu0 }
 0x362   : > { %v948_v48 = vsel %vm571_vm2, %v862_v47, -inf }
 0x363   : > { %v1789_v49 = vpop.f32.mrf.mxu0  ;;  %949 = vmax.xlane.f32.xlu1 %v948_v48 }
 0x364   : > { %v1705_v49 = vld [vmem:[%s2465_s6] ss:$0 sm:$0xff] }
 0x365   : > { %v938_v50 = vpop.f32.mrf.mxu1 }
 0x366   : > { %v951_v51 = vsel %vm571_vm2, %v938_v50, -inf }
 0x367   : > { %952 = vmax.xlane.f32.xlu0 %v951_v51  ;;  %v1794_v52 = vpop.f32.mrf.mxu1 }
 0x374   : > { %578 = vrot.lane.b32.xlu1 %v2230_v23, %s2052_s17  ;;  %s2058_s17 = smov 24  }
 0x3df   : > { %v944_v53 = vpop.xlane.xlu1 %943 }
 0x3e0   : > { %v954_v54 = vsub.f32 %v710_v41, %v944_v53 }
 0x3e2   : > { %v958_v55 = vmul.f32 1.442695, %v954_v54 }
 0x3e3   : > { %v947_v56 = vpop.xlane.xlu0 %946 }
 0x3e4   : > { %1945 = vpow2.f32 %v958_v55  ;;  %v955_v57 = vsub.f32 %v786_v44, %v947_v56 }
 0x3e6   : > { %v960_v58 = vmul.f32 1.442695, %v955_v57 }
 0x3e8   : > { %1947 = vpow2.f32 %v960_v58 }
 0x3ec   : > { %v950_v59 = vpop.xlane.xlu1 %949 }
 0x3ed   : > { %v956_v60 = vsub.f32 %v862_v47, %v950_v59 }
 0x3ef   : > { %v962_v61 = vmul.f32 1.442695, %v956_v60  ;;  %v1418_v60 = vld [vmem:[%s2468_s9 + $0x18] sm:$0xff] }
 0x3f0   : > { %v579_v62 = vpop.permute.xlu1 %578  ;;  %v953_v63 = vpop.xlane.xlu0 %952 }
 0x3f1   : > { %v1946_v1 = vpop.eup %1945  ;;  %1949 = vpow2.f32 %v962_v61  ;;  %581 = vst.msk [vmem:[#allocation4] sm:$0xff] %vm571_vm2, %v579_v62  ;;  %v957_v2 = vsub.f32 %v938_v50, %v953_v63  ;;  %v1416_v61 = vld [vmem:[%s2468_s9 + $0x8] sm:$0xff]  ;;  %v1415_v62 = vld [vmem:[%s2468_s9] sm:$0xff]  ;;  %v1519_v63 = vld [vmem:[%s2470_s11 + $0x78] sm:$0xff] }
 0x3f2   : > { %v966_v3 = vsel %vm571_vm2, %v1946_v1, 0.0 }
 0x3f3   : > { %v964_v4 = vmul.f32 1.442695, %v957_v2  ;;  %967 = vadd.xlane.f32.xlu1 %v966_v3  ;;  %v1517_v2 = vld [vmem:[%s2470_s11 + $0x68] sm:$0xff]  ;;  %v1516_v3 = vld [vmem:[%s2470_s11 + $0x60] sm:$0xff] }
 0x3f5   : > { %v1948_v5 = vpop.eup %1947  ;;  %1951 = vpow2.f32 %v964_v4 }
 0x3f6   : > { %v969_v6 = vsel %vm571_vm2, %v1948_v5, 0.0 }
 0x3f7   : > { %970 = vadd.xlane.f32.xlu0 %v969_v6 }
 0x3f8   : > { %v986_v7 = vld [vmem:[#allocation4] sm:$0xff] }
 0x3f9   : > { %1796 = vmatpush3.msra.mxu0 %v986_v7 }
 0x3fa   : > { %1805 = vmatprep.subr.mxu0 %v2043_v8 }
 0x3fe   : > { %v1950_v9 = vpop.eup %1949 }
 0x3ff   : > { %v972_v10 = vsel %vm571_vm2, %v1950_v9, 0.0 }
 0x400   : > { %973 = vadd.xlane.f32.xlu1 %v972_v10 }
 0x402   : > { %v1952_v11 = vpop.eup %1951 }
 0x403   : > { %v975_v12 = vsel %vm571_vm2, %v1952_v11, 0.0 }
 0x404   : > { %976 = vadd.xlane.f32.xlu0 %v975_v12 }
 0x411   : > { %608 = vrot.lane.b32.xlu1 %v2230_v23, %s2053_s19 }
 0x415   : > { %623 = vrot.lane.b32.xlu1 %v2230_v23, %s2054_s22  ;;  %s1687_s22 = sshll.u32 %s443_s0, 3 }
 0x41a   : > { %593 = vrot.lane.b32.xlu0 %v2230_v23, %s2055_s23 }
 0x47c   : > { %v968_v13 = vpop.xlane.xlu1 %967 }
 0x47d   : > { %1953 = vrcp.f32 %v968_v13 }
 0x480   : > { %v971_v14 = vpop.xlane.xlu0 %970 }
 0x481   : > { %1955 = vrcp.f32 %v971_v14  ;;  %v1515_v14 = vld [vmem:[%s2470_s11 + $0x58] sm:$0xff] }
 0x489   : > { %v974_v15 = vpop.xlane.xlu1 %973 }
 0x48a   : > { %v1954_v16 = vpop.eup %1953  ;;  %1957 = vrcp.f32 %v974_v15  ;;  %v1514_v15 = vld [vmem:[%s2470_s11 + $0x50] sm:$0xff] }
 0x48b   : > { %v982_v17 = vmul.f32 %v1954_v16, %v1946_v1  ;;  %v1518_v1 = vld [vmem:[%s2470_s11 + $0x70] sm:$0xff]  ;;  %v1513_v16 = vld [vmem:[%s2470_s11 + $0x48] sm:$0xff] }
 0x48d   : > { %1798 = vmatmul.mubr.msk.f32.vlgmr.msra.gmra.mxu0 %vm571_vm2, %v982_v17  ;;  %v609_v18 = vpop.permute.xlu1 %608  ;;  %v977_v19 = vpop.xlane.xlu0 %976  ;;  %v1512_v17 = vld [vmem:[%s2470_s11 + $0x40] sm:$0xff] }
 0x48e   : > { %612 = vst.msk [vmem:[#allocation4 + $0x10] sm:$0xff] %vm571_vm2, %v609_v18  ;;  %1959 = vrcp.f32 %v977_v19  ;;  %1807 = vmatprep.mubr.msk.f32.mxu0 %vm2044_vm1, %v2043_v8  ;;  %v1956_v23 = vpop.eup %1955  ;;  %v1511_v18 = vld [vmem:[%s2470_s11 + $0x38] sm:$0xff]  ;;  %v1510_v19 = vld [vmem:[%s2470_s11 + $0x30] sm:$0xff] }
 0x48f   : > { %v983_v27 = vmul.f32 %v1956_v23, %v1948_v5  ;;  %v1506_v23 = vld [vmem:[%s2470_s11 + $0x10] sm:$0xff] }
 0x491   : > { %v624_v20 = vpop.permute.xlu1 %623  ;;  %v594_v21 = vpop.permute.xlu0 %593 }
 0x492   : > { %627 = vst.msk [vmem:[#allocation4 + $0x18] sm:$0xff] %vm571_vm2, %v624_v20  ;;  %597 = vst.msk [vmem:[#allocation4 + $0x8] sm:$0xff] %vm571_vm2, %v594_v21  ;;  %v1509_v20 = vld [vmem:[%s2470_s11 + $0x28] sm:$0xff]  ;;  %v1508_v21 = vld [vmem:[%s2470_s11 + $0x20] sm:$0xff] }
 0x495   : > { %v988_v22 = vld [vmem:[#allocation4 + $0x10] sm:$0xff] }
 0x496   : > { %1806 = vmatpush3.msra.mxu0 %v988_v22  ;;  %v1507_v22 = vld [vmem:[%s2470_s11 + $0x18] sm:$0xff] }
 0x497   : > { %v1958_v24 = vpop.eup %1957  ;;  %1837 = vmatprep.subr.mxu0 %v2043_v8 }
 0x498   : > { %v984_v25 = vmul.f32 %v1958_v24, %v1950_v9  ;;  %v1707_v9 = vld [vmem:[%s2466_s7] ss:$0 sm:$0xff]  ;;  %v1505_v24 = vld [vmem:[%s2470_s11 + $0x8] sm:$0xff] }
 0x499   : > { %v987_v26 = vld [vmem:[#allocation4 + $0x8] sm:$0xff]  ;;  %v989_v29 = vld [vmem:[#allocation4 + $0x18] sm:$0xff] }
 0x49a   : > { %1801 = vmatpush3.msra.mxu1 %v987_v26  ;;  %1808 = vmatmul.mubr.msk.f32.vlgmr.msra.gmra.mxu0 %vm571_vm2, %v984_v25  ;;  %v1504_v25 = vld [vmem:[%s2470_s11] sm:$0xff] }
 0x49b   : > { %v1960_v28 = vpop.eup %1959  ;;  %1803 = vmatmul.mubr.msk.f32.vlgmr.msra.gmra.mxu1 %vm571_vm2, %v983_v27  ;;  %1810 = vmatprep.subr.mxu1 %v2043_v8  ;;  %v1709_v26 = vld [vmem:[%s2469_s10] ss:$0 sm:$0xff] }
 0x49c   : > { %1811 = vmatpush3.msra.mxu1 %v989_v29  ;;  %1812 = vmatprep.mubr.msk.f32.mxu1 %vm2044_vm1, %v2043_v8  ;;  %v985_v30 = vmul.f32 %v1960_v28, %v1952_v11  ;;  %v1708_v11 = vld [vmem:[%s2467_s8] ss:$0 sm:$0xff] }
 0x49d   : > { %1815 = vmatprep.subr.mxu1 %v2043_v8  ;;  %1869 = vmatprep.mubr.msk.f32.mxu0 %vm2044_vm1, %v2043_v8 }
 0x49e   : > { %1838 = vmatpush3.msra.mxu0 %v1519_v63 }
 0x49f   : > { %1813 = vmatmul.mubr.msk.f32.vlgmr.msra.gmra.mxu1 %vm571_vm2, %v985_v30  ;;  %1839 = vmatprep.subr.mxu0 %v2043_v8 }
 0x4a0   : > { %1823 = vmatprep.mubr.msk.f32.mxu1 %vm2044_vm1, %v2043_v8  ;;  %1816 = vmatpush3.msra.mxu1 %v1302_v31 }
 0x4a1   : > { %1817 = vmatprep.subr.mxu1 %v2043_v8  ;;  %1840 = vmatpush3.msra.mxu0 %v1518_v1 }
 0x4a2   : > { %1818 = vmatpush3.msra.mxu1 %v1301_v33  ;;  %1841 = vmatprep.subr.mxu0 %v2043_v8 }
 0x4a3   : > { %1819 = vmatprep.subr.mxu1 %v2043_v8  ;;  %1842 = vmatpush3.msra.mxu0 %v1517_v2 }
 0x4a4   : > { %1820 = vmatpush3.msra.mxu1 %v1300_v35  ;;  %1843 = vmatprep.subr.mxu0 %v2043_v8 }
 0x4a5   : > { %1821 = vmatprep.subr.mxu1 %v2043_v8  ;;  %1844 = vmatpush3.msra.mxu0 %v1516_v3 }
 0x4a6   : > { %1822 = vmatpush3.msra.mxu1 %v1299_v36  ;;  %1845 = vmatprep.subr.mxu0 %v2043_v8 }
 0x4a7   : > { %1826 = vmatprep.subr.mxu1 %v2043_v8  ;;  %1846 = vmatpush3.msra.mxu0 %v1515_v14 }
 0x4a8   : > { %1847 = vmatprep.subr.mxu0 %v2043_v8 }
 0x4a9   : > { %1848 = vmatpush3.msra.mxu0 %v1514_v15 }
 0x4aa   : > { %1849 = vmatprep.subr.mxu0 %v2043_v8 }
 0x4ab   : > { %1850 = vmatpush3.msra.mxu0 %v1513_v16 }
 0x4ac   : > { %1851 = vmatprep.subr.mxu0 %v2043_v8 }
 0x4ad   : > { %1852 = vmatpush3.msra.mxu0 %v1512_v17 }
 0x4ae   : > { %1853 = vmatprep.subr.mxu0 %v2043_v8 }
 0x4af   : > { %1854 = vmatpush3.msra.mxu0 %v1511_v18 }
 0x4b0   : > { %1855 = vmatprep.subr.mxu0 %v2043_v8 }
 0x4b1   : > { %1856 = vmatpush3.msra.mxu0 %v1510_v19 }
 0x4b2   : > { %1857 = vmatprep.subr.mxu0 %v2043_v8 }
 0x4b3   : > { %1858 = vmatpush3.msra.mxu0 %v1509_v20 }
 0x4b4   : > { %1859 = vmatprep.subr.mxu0 %v2043_v8 }
 0x4b5   : > { %1860 = vmatpush3.msra.mxu0 %v1508_v21 }
 0x4b6   : > { %1861 = vmatprep.subr.mxu0 %v2043_v8 }
 0x4b7   : > { %1862 = vmatpush3.msra.mxu0 %v1507_v22 }
 0x4b8   : > { %1863 = vmatprep.subr.mxu0 %v2043_v8 }
 0x4b9   : > { %1864 = vmatpush3.msra.mxu0 %v1506_v23 }
 0x4ba   : > { %1865 = vmatprep.subr.mxu0 %v2043_v8 }
 0x4bb   : > { %1866 = vmatpush3.msra.mxu0 %v1505_v24 }
 0x4bc   : > { %1867 = vmatprep.subr.mxu0 %v2043_v8 }
 0x4bd   : > { %1868 = vmatpush3.msra.mxu0 %v1504_v25 }
 0x54d   : > { %v1059_v32 = vpop.f32.mrf.mxu0 }
 0x54f   : > { %v1799_v34 = vpop.f32.mrf.mxu0 }
 0x55a   : > { %v1205_v37 = vpop.f32.mrf.mxu0 }
 0x55b   : > { %1287 = vrot.lane.b32.xlu1 %v1205_v37, %s2056_s14  ;;  %v1132_v38 = vpop.f32.mrf.mxu1  ;;  %s1713_s14 = sshll.u32 %s2033_s28, 7  ;;  %s2059_s28 = smov [#allocation5]  }
 0x55c   : > { %v1809_v39 = vpop.f32.mrf.mxu0  ;;  %1283 = vrot.lane.b32.xlu0 %v1132_v38, %s2057_s15  ;;  %s445_s15 = scalar_lea.vmem [#allocation5], %s1687_s22  ;;  %s1612_s2 = scalar_lea.hbm %s2472_s13, %s1713_s14 }
 0x55d   : > { %v1804_v40 = vpop.f32.mrf.mxu1  ;;  %s1969_s22 = sshll.u32 %s2059_s28, 4  ;;  %s1970_s22 = int_to_ptr.vmem [resolvable:$false] %s1969_s22 }
 0x55e   : > { %s1971_s23 = scalar_lea.vmem %s1970_s22, 256 }
 0x55f   : > { %v1278_v41 = vpop.f32.mrf.mxu1 }
 0x560   : > { %1291 = vrot.lane.b32.xlu0 %v1278_v41, %s2058_s17  ;;  %s1614_s17 = sshll.u32 %s445_s15, 4  ;;  %s1615_s17 = int_to_ptr.vmem [resolvable:$true] %s1614_s17 }
 0x561   : > { %v1814_v42 = vpop.f32.mrf.mxu1  ;;  %s1965_s4 = scalar_lea.vmem %s1615_s17, 128  ;;  %p1972_p1 = scmp.lt.s32.totalorder %s1615_s17, %s1970_s22 }
 0x562   : > { %p1966_p12 = scmp.ne.s32.totalorder %s1615_s17, %s1965_s4  ;;  %p1973_p2 = scmp.lt.s32.totalorder %s1971_s23, %s1965_s4 }
 0x564   : > { %p1967_p13 = pnand %p1966_p12, %p2170_p4  ;;  %p1974_p3 = por %p1973_p2, %p1972_p1 }
 0x566   : > { %p1968_p0 = pneg %p1967_p13 }
 0x568   : > { %p1975_p5 = pnand %p1974_p3, %p1968_p0 }
 0x5cd   : > { %v1288_v45 = vpop.permute.xlu1 %1287 }
 0x5ce   : > { %v1284_v43 = vpop.permute.xlu0 %1283 }
 0x5cf   : > { %v1294_v44 = vsel %vm571_vm2, %v1059_v32, %v1284_v43 }
 0x5d0   : > { %v1296_v46 = vsel %vm1295_vm3, %v1294_v44, %v1288_v45 }
 0x5d2   : > { %v1292_v47 = vpop.permute.xlu0 %1291 }
 0x5d3   : > { %v1298_v48 = vsel %vm1297_vm4, %v1296_v46, %v1292_v47 }
 0x5d4   : > { %1824 = vmatmul.mubr.msk.f32.vlgmr.msra.gmra.mxu1 %vm457_vm0, %v1298_v48 }
 0x5d5   : > { %1834 = vmatprep.mubr.msk.f32.mxu1 %vm2044_vm1, %v2043_v8  ;;  %1827 = vmatpush3.msra.mxu1 %v1418_v60 }
 0x5d6   : > { %1828 = vmatprep.subr.mxu1 %v2043_v8 }
 0x694   : > { %v1380_v50 = vpop.f32.mrf.mxu1 }
 0x695   : > { %v1381_v51 = vadd.f32 %v1705_v49, %v1380_v50 }
 0x696   : > { %v1825_v52 = vpop.f32.mrf.mxu1 }
 0x697   : > { %v2321_v53 = vadd.f32 %v1381_v51, %v2190_v0  ;;  %v1417_v0 = vld [vmem:[%s2468_s9 + $0x10] sm:$0xff] }
 0x698   : > { %1829 = vmatpush3.msra.mxu1 %v1417_v0 }
 0x699   : > { %v1387_v54 = vsel %vm457_vm0, %v2321_v53, 0.0  ;;  %1830 = vmatprep.subr.mxu1 %v2043_v8 }
 0x69a   : > { %1388 = vadd.xlane.f32.xlu1 %v1387_v54  ;;  %1831 = vmatpush3.msra.mxu1 %v1416_v61 }
 0x69b   : > { %1832 = vmatprep.subr.mxu1 %v2043_v8  ;;  %v1711_v8 = vld [vmem:[%s2471_s12] ss:$0 sm:$0xff] }
 0x69c   : > { %1833 = vmatpush3.msra.mxu1 %v1415_v62 }
 0x723   : > { %v1389_v55 = vpop.xlane.xlu1 %1388 }
 0x724   : > { %v1391_v56 = vmul.f32 0.03125, %v1389_v55 }
 0x726   : > { %v1392_v57 = vsub.f32 %v2321_v53, %v1391_v56 }
 0x728   : > { %v1393_v58 = vmul.f32 %v1392_v57, %v1392_v57 }
 0x72a   : > { %v1394_v59 = vsel %vm457_vm0, %v1393_v58, 0.0 }
 0x72b   : > { %1395 = vadd.xlane.f32.xlu0 %v1394_v59 }
 0x7b4   : > { %v1396_v4 = vpop.xlane.xlu0 %1395 }
 0x7b5   : > { %v1397_v5 = vmul.f32 0.03125, %v1396_v4 }
 0x7b7   : > { %v1398_v6 = vadd.f32 1e-05, %v1397_v5 }
 0x7b9   : > { %1961 = vrsqrt.f32 %v1398_v6 }
 0x7c6   : > { %v1962_v7 = vpop.eup %1961 }
 0x7c7   : > { %v1400_v10 = vmul.f32 %v1962_v7, %v1392_v57 }
 0x7c9   : > { %v1407_v12 = vmul.f32 %v1707_v9, %v1400_v10 }
 0x7cb   : > { %v1414_v13 = vadd.f32 %v1708_v11, %v1407_v12 }
 0x7cd   : > { %1835 = vmatmul.mubr.msk.f32.vlgmr.msra.gmra.mxu1 %vm457_vm0, %v1414_v13 }
 0x88d   : > { %v1495_v27 = vpop.f32.mrf.mxu1 }
 0x88e   : > { %v1496_v28 = vadd.f32 %v1709_v26, %v1495_v27 }
 0x88f   : > { %v1836_v29 = vpop.f32.mrf.mxu1 }
 0x890   : > { %v1500_v30 = vmul.f32 0.70710677, %v1496_v28  ;;  %v1499_v32 = vmul.f32 0.5, %v1496_v28 }
 0x892   : > { %1963 = verf.f32 %v1500_v30 }
 0x89f   : > { %v1964_v31 = vpop.eup %1963 }
 0x8a0   : > { %v1502_v33 = vadd.f32 1.0, %v1964_v31 }
 0x8a2   : > { %v1503_v34 = vmul.f32 %v1502_v33, %v1499_v32 }
 0x8a4   : > { %1870 = vmatmul.mubr.f32.vlgmr.msra.gmra.mxu0 %v1503_v34 }
 0x964   : > { %v1593_v35 = vpop.f32.mrf.mxu0 }
 0x965   : > { %v1594_v36 = vadd.f32 %v1711_v8, %v1593_v35 }
 0x966   : > { %v1871_v37 = vpop.f32.mrf.mxu0 }
 0x967   : > { %v1597_v38 = vadd.f32 %v1594_v36, %v2321_v53 }
 0x969   : > { %1598 = vst.msk [vmem:[%s445_s15] sm:$0xff] %vm457_vm0, %v1597_v38 }
 0x96a   : > { %1978 = shalt.err (!%p1975_p5)
}
 0x96b   : > { %s1979_s1 = scalar_lea.hbm %s1612_s2, 128  ;;  %s1983_s14 = scalar_lea.hbm %s2472_s13, 256 }
 0x96c   : > { %p1980_p6 = scmp.ne.s32.totalorder %s1612_s2, %s1979_s1  ;;  %p1984_p10 = scmp.lt.s32.totalorder %s1612_s2, %s2472_s13 }
 0x96d   : > { %p1985_p11 = scmp.lt.s32.totalorder %s1983_s14, %s1979_s1 }
 0x96e   : > { %p1981_p7 = pnand %p1980_p6, %p2170_p4 }
 0x96f   : > { %p1986_p12 = por %p1985_p11, %p1984_p10 }
 0x970   : > { %p1982_p9 = pneg %p1981_p7 }
 0x972   : > { %p1987_p13 = pnand %p1986_p12, %p1982_p9 }
 0x974   : > { %1990 = shalt.err (!%p1987_p13)
}
 0x975   : > { %1872 = dma.vmem_to_hbm [thread:$0]  (%p2170_p4), %s1615_s17, 128, %s1612_s2, %s1600_s3  }
 0x976 PF: > { %p1878_p0 = scmp.ge.s32.totalorder %s2041_s30, 2  ;;  %s1626_s4 = sand.u32 1, %s2021_s25  }
 0x977   : > { %s1627_s28 = scalar_lea.sflag [#allocation6], %s1626_s4 }
 0x978   : > { %p1875_p1 = pnand %p1878_p0, %p2177_p8 }
 0x97a   : > { %p1876_p2 = pneg %p1875_p1 }
 0x97c   : > { %2016 = dma.done.wait (%p1876_p2), %s1627_s28, 128  }
 0x97d   : > { %2018 = vsyncadd (%p1876_p2), %s1627_s28, 4294967168  ;;  %s26_s30 = sadd.s32 1, %s2041_s30   ;;  %s2485_s25 = smov %s2025_s26 }
 0x97e   : > { %p23_p3 = scmp.ge.s32.totalorder %s26_s30, 4   ;;  %s2486_s26 = smov %s2029_s27 }
 0x97f   : > { %s2487_s27 = smov %s2183_s21  ;;  %s2488_s28 = smov %s2037_s29 }
 0x980   : > { %s2489_s29 = smov %s2491_s16  ;;  %25 = sbr.rel (!%p23_p3) target bundleno = 10 (0xa), region = 120 }
 0x985   :  { %1632 = vsyncpa [#allocation6], 1 }
 0x986   :  { %1634 = vsyncpa [#allocation6 + $0x1], 1 }

// kernel: tpu_custom_call.1
= control target key start
LH: loop header
LB: loop body
LE: loop exit
PB: predicated region body
PF: predicated region fallthrough
CT: control target
= control target key end

     0   :  { %s2459_s0 = inlined_call_operand.vmem [shape: f32[2,8,32], index: 0, kind: input, shape index: {}]   ;;  %s2460_s1 = inlined_call_operand.vmem [shape: f32[1,32], index: 1, kind: input, shape index: {}]   ;;  %s2461_s2 = inlined_call_operand.vmem [shape: f32[1,32], index: 2, kind: input, shape index: {}]   ;;  %s2462_s3 = inlined_call_operand.vmem [shape: f32[32,96], index: 3, kind: input, shape index: {}]   ;;  %s2463_s4 = inlined_call_operand.vmem [shape: f32[1,96], index: 4, kind: input, shape index: {}]   ;;  %s2464_s5 = inlined_call_operand.vmem [shape: f32[32,32], index: 5, kind: input, shape index: {}]   ;;  %s2465_s6 = inlined_call_operand.vmem [shape: f32[1,32], index: 6, kind: input, shape index: {}]   ;;  %s2466_s7 = inlined_call_operand.vmem [shape: f32[1,32], index: 7, kind: input, shape index: {}]   ;;  %s2467_s8 = inlined_call_operand.vmem [shape: f32[1,32], index: 8, kind: input, shape index: {}]   ;;  %s2468_s9 = inlined_call_operand.vmem [shape: f32[32,128], index: 9, kind: input, shape index: {}]   ;;  %s2469_s10 = inlined_call_operand.vmem [shape: f32[1,128], index: 10, kind: input, shape index: {}]   ;;  %s2470_s11 = inlined_call_operand.vmem [shape: f32[128,32], index: 11, kind: input, shape index: {}]   ;;  %s2471_s12 = inlined_call_operand.vmem [shape: f32[1,32], index: 12, kind: input, shape index: {}]   ;;  %s2472_s13 = inlined_call_operand.hbm [shape: f32[2,8,32], index: 13, kind: output, shape index: {}]  }
   0x1   :  { %2473 = sst [smem:[#allocation8_spill]] %s2459_s0 }
   0x2   :  { %2474 = sst [smem:[#allocation9_spill]] %s2460_s1 }
   0x3   :  { %2475 = sst [smem:[#allocation10_spill]] %s2461_s2 }
   0x4   :  { %2476 = sst [smem:[#allocation11_spill]] %s2462_s3 }
   0x5   :  { %2477 = sst [smem:[#allocation12_spill]] %s2463_s4 }
   0x6   :  { %18 = vsyncpa [#allocation6], 0 }
   0x7   :  { %20 = vsyncpa [#allocation6 + $0x1], 0  ;;  %s2130_s25 = smov 0   ;;  %s2132_s26 = smov 0  }
   0x8   :  { %s2134_s27 = smov 0   ;;  %s2136_s28 = smov 0  }
   0x9   :  { %s2138_s29 = smov 0   ;;  %s2140_s30 = smov 0  }
   0xa LB: > { %s1682_s14 = sadd.s32 4294967295, %s2041_s30   ;;  %s1683_s15 = sadd.s32 4294967294, %s2041_s30   ;;  %s2041_s30 = sphi %s2140_s30, %s26_s30   ;;  %s2037_s29 = sphi %s2138_s29, %s2489_s29   ;;  %s2033_s28 = sphi %s2136_s28, %s2488_s28   ;;  %s2029_s27 = sphi %s2134_s27, %s2487_s27   ;;  %s2025_s26 = sphi %s2132_s26, %s2486_s26   ;;  %s2021_s25 = sphi %s2130_s25, %s2485_s25  }
   0xb   : > { %s38_s16 = sadd.s32 1, %s2037_s29  ;;  %s325_s17 = sadd.s32 1, %s2029_s27 }
   0xc   : > { %p40_p0 = scmp.ge.s32.totalorder %s38_s16, 2  ;;  %p335_p1 = scmp.ne.s32.totalorder %s2029_s27, %s2025_s26 }
   0xd   : > { %p336_p2 = scmp.eq.s32.totalorder %s1682_s14, 1  ;;  %p341_p3 = scmp.ne.s32.totalorder %s2025_s26, %s2021_s25 }
   0xe   : > { %s2491_s16 = smov (%p40_p0, %s38_s16), 0  ;;  %p342_p5 = scmp.eq.s32.totalorder %s1683_s15, 1 }
   0xf   : > { %p2170_p4 = por %p336_p2, %p335_p1  ;;  %s320_s19 = ssub.s32 %s2037_s29, %s2491_s16 }
  0x10   : > { %p1686_p6 = scmp.ge.s32.totalorder %s2041_s30, 1  ;;  %p323_p7 = scmp.eq.s32.totalorder %s320_s19, 0 }
  0x11   : > { %p2177_p8 = por %p342_p5, %p341_p3  ;;  %p403_p9 = scmp.lt.s32.totalorder %s2041_s30, 3 }
  0x12   : > { %s2183_s21 = scalar_select %p323_p7, %s2029_s27, %s325_s17  }
  0x13   : > { %p404_p10 = pnand %p1686_p6, %p403_p9 }
  0x14   : > { %p446_p11 = scmp.lt.s32.totalorder (!%p404_p10), %s2033_s28, 1  ;;  %s2480_s0 = sld [smem:[#allocation8_spill]] (!%p404_p10) }
  0x15   : > { %407 = sbr.rel (%p404_p10) target bundleno = 2422 (0x976), region = 72  ;;  %s2481_s3 = sld [smem:[#allocation11_spill]] (!%p404_p10) }
  0x16   : > { %s2482_s1 = sld [smem:[#allocation9_spill]] (!%p404_p10)  ;;  %s2045_s17 = smov (!%p404_p10), 96  }
  0x17   : > { %s2483_s2 = sld [smem:[#allocation10_spill]] (!%p404_p10)  ;;  %s2046_s19 = smov (!%p404_p10), 120  }
  0x18   : > { %s2484_s4 = sld [smem:[#allocation12_spill]] (!%p404_p10)  ;;  %s2049_s24 = smov (!%p404_p10), 72  }
  0x19   : > { %s2050_s14 = smov (!%p404_p10), 112  }
  0x1a   : > { %s447_s22 = scalar_select %p446_p11, %s2033_s28, 1  ;;  %vm457_vm0 = vcmask 261120   ;;  %v2043_v8 = vmov 0.0   ;;  %vm2044_vm1 = vmmov 0   ;;  %vm571_vm2 = vcmask 64512  }
  0x1b   : > { %v489_v7 = vld [vmem:[%s2481_s3 + $0x18] sm:$0xff]  ;;  %1764 = vmatprep.subr.mxu1 %v2043_v8  ;;  %v488_v9 = vld [vmem:[%s2481_s3 + $0x10] sm:$0xff]  ;;  %1772 = vmatprep.mubr.msk.f32.mxu1 %vm2044_vm1, %v2043_v8  ;;  %v487_v10 = vld [vmem:[%s2481_s3 + $0x8] sm:$0xff]  ;;  %vm1295_vm3 = vcmask 130048   ;;  %vm1297_vm4 = vcmask 195584  }
  0x1c   : > { %s1688_s23 = sshll.u32 %s447_s22, 3  ;;  %1765 = vmatpush3.msra.mxu1 %v489_v7  ;;  %1785 = vmatprep.subr.mxu0 %v2043_v8  ;;  %v486_v11 = vld [vmem:[%s2481_s3] sm:$0xff]  ;;  %s2047_s22 = smov 88  }
  0x1d   : > { %s449_s15 = scalar_lea.vmem %s2480_s0, %s1688_s23  ;;  %1766 = vmatprep.subr.mxu1 %v2043_v8  ;;  %1787 = vmatprep.mubr.msk.f32.mxu0 %vm2044_vm1, %v2043_v8  ;;  %v1689_v16 = vld [vmem:[%s2482_s1] ss:$0 sm:$0xff]  ;;  %s2048_s23 = smov 80  }
  0x1e   : > { %v2190_v0 = vld [vmem:[%s449_s15] sm:$0xff]  ;;  %1767 = vmatpush3.msra.mxu1 %v488_v9  ;;  %s2051_s15 = smov 104   ;;  %s443_s0 = sand.u32 1, %s2025_s26  }
  0x1f   : > { %v458_v1 = vsel %vm457_vm0, %v2190_v0, 0.0  ;;  %1768 = vmatprep.subr.mxu1 %v2043_v8  ;;  %v1690_v18 = vld [vmem:[%s2483_s2] ss:$0 sm:$0xff]  ;;  %s1600_s3 = scalar_lea.sflag [#allocation6], %s443_s0 }
  0x20   : > { %459 = vadd.xlane.f32.xlu0 %v458_v1  ;;  %1769 = vmatpush3.msra.mxu1 %v487_v10  ;;  %v1691_v21 = vld [vmem:[%s2484_s4] ss:$0 sm:$0xff] }
  0x21   : > { %1770 = vmatprep.subr.mxu1 %v2043_v8 }
  0x22   : > { %1771 = vmatpush3.msra.mxu1 %v486_v11 }
  0x23   : > { %1775 = vmatprep.subr.mxu1 %v2043_v8 }
  0xa9   : > { %v460_v2 = vpop.xlane.xlu0 %459 }
  0xaa   : > { %v462_v3 = vmul.f32 0.03125, %v460_v2 }
  0xac   : > { %v463_v4 = vsub.f32 %v2190_v0, %v462_v3 }
  0xae   : > { %v464_v5 = vmul.f32 %v463_v4, %v463_v4 }
  0xb0   : > { %v465_v6 = vsel %vm457_vm0, %v464_v5, 0.0 }
  0xb1   : > { %466 = vadd.xlane.f32.xlu0 %v465_v6 }
 0x13a   : > { %v467_v12 = vpop.xlane.xlu0 %466 }
 0x13b   : > { %v468_v13 = vmul.f32 0.03125, %v467_v12 }
 0x13d   : > { %v469_v14 = vadd.f32 1e-05, %v468_v13 }
 0x13f   : > { %1943 = vrsqrt.f32 %v469_v14 }
 0x14c   : > { %v1944_v15 = vpop.eup %1943 }
 0x14d   : > { %v471_v17 = vmul.f32 %v1944_v15, %v463_v4 }
 0x14f   : > { %v478_v19 = vmul.f32 %v1689_v16, %v471_v17 }
 0x151   : > { %v485_v20 = vadd.f32 %v1690_v18, %v478_v19 }
 0x153   : > { %1773 = vmatmul.mubr.msk.f32.vlgmr.msra.gmra.mxu1 %vm457_vm0, %v485_v20 }
 0x154   : > { %1777 = vmatprep.mubr.msk.f32.mxu1 %vm2044_vm1, %v2043_v8 }
 0x213   : > { %v566_v22 = vpop.f32.mrf.mxu1 }
 0x214   : > { %v2230_v23 = vadd.f32 %v1691_v21, %v566_v22 }
 0x215   : > { %v1774_v24 = vpop.f32.mrf.mxu1 }
 0x216   : > { %574 = vrot.lane.b32.xlu1 %v2230_v23, %s2045_s17  ;;  %v570_v25 = vmul.f32 0.35355338, %v2230_v23  ;;  %s2052_s17 = smov 64  }
 0x218   : > { %583 = vrot.lane.b32.xlu0 %v570_v25, %s2046_s19  ;;  %572 = vst.msk [vmem:[#allocation2] sm:$0xff] %vm571_vm2, %v570_v25  ;;  %s2053_s19 = smov 48  }
 0x21a   : > { %588 = vrot.lane.b32.xlu1 %v2230_v23, %s2047_s22  ;;  %s2054_s22 = smov 40  }
 0x21e   : > { %603 = vrot.lane.b32.xlu1 %v2230_v23, %s2048_s23  ;;  %s2055_s23 = smov 56  }
 0x21f   : > { %v629_v31 = vld [vmem:[#allocation2] sm:$0xff] }
 0x222   : > { %618 = vrot.lane.b32.xlu1 %v2230_v23, %s2049_s24 }
 0x226   : > { %598 = vrot.lane.b32.xlu1 %v570_v25, %s2050_s14  ;;  %s2056_s14 = smov 16  }
 0x22a   : > { %613 = vrot.lane.b32.xlu1 %v570_v25, %s2051_s15  ;;  %s2057_s15 = smov 8  }
 0x288   : > { %v575_v26 = vpop.permute.xlu1 %574 }
 0x289   : > { %577 = vst.msk [vmem:[#allocation3] sm:$0xff] %vm571_vm2, %v575_v26 }
 0x28a   : > { %v584_v27 = vpop.permute.xlu0 %583 }
 0x28b   : > { %587 = vst.msk [vmem:[#allocation2 + $0x8] sm:$0xff] %vm571_vm2, %v584_v27 }
 0x28c   : > { %v589_v28 = vpop.permute.xlu1 %588 }
 0x28d   : > { %592 = vst.msk [vmem:[#allocation3 + $0x8] sm:$0xff] %vm571_vm2, %v589_v28 }
 0x290   : > { %v604_v29 = vpop.permute.xlu1 %603  ;;  %v633_v30 = vld [vmem:[#allocation3] sm:$0xff] }
 0x291   : > { %607 = vst.msk [vmem:[#allocation3 + $0x10] sm:$0xff] %vm571_vm2, %v604_v29  ;;  %1776 = vmatpush3.xpose.msk.msra.mxu1 %vm571_vm2, %v633_v30 }
 0x292   : > { %1780 = vmatprep.subr.mxu1 %v2043_v8  ;;  %v630_v34 = vld [vmem:[#allocation2 + $0x8] sm:$0xff] }
 0x294   : > { %v619_v32 = vpop.permute.xlu1 %618  ;;  %1778 = vmatmul.mubr.msk.f32.vlgmr.msra.gmra.mxu1 %vm571_vm2, %v629_v31  ;;  %v634_v33 = vld [vmem:[#allocation3 + $0x8] sm:$0xff]  ;;  %v1302_v31 = vld [vmem:[%s2464_s5 + $0x18] sm:$0xff] }
 0x295   : > { %622 = vst.msk [vmem:[#allocation3 + $0x18] sm:$0xff] %vm571_vm2, %v619_v32  ;;  %1781 = vmatpush3.xpose.msk.msra.mxu1 %vm571_vm2, %v634_v33  ;;  %1782 = vmatprep.mubr.msk.f32.mxu1 %vm2044_vm1, %v2043_v8  ;;  %v1301_v33 = vld [vmem:[%s2464_s5 + $0x10] sm:$0xff] }
 0x296   : > { %1790 = vmatprep.subr.mxu1 %v2043_v8 }
 0x298   : > { %v599_v35 = vpop.permute.xlu1 %598  ;;  %1783 = vmatmul.mubr.msk.f32.vlgmr.msra.gmra.mxu1 %vm571_vm2, %v630_v34  ;;  %v635_v36 = vld [vmem:[#allocation3 + $0x10] sm:$0xff] }
 0x299   : > { %602 = vst.msk [vmem:[#allocation2 + $0x10] sm:$0xff] %vm571_vm2, %v599_v35  ;;  %1786 = vmatpush3.xpose.msk.msra.mxu0 %vm571_vm2, %v635_v36  ;;  %1792 = vmatprep.mubr.msk.f32.mxu1 %vm2044_vm1, %v2043_v8  ;;  %v1300_v35 = vld [vmem:[%s2464_s5 + $0x8] sm:$0xff]  ;;  %v1299_v36 = vld [vmem:[%s2464_s5] sm:$0xff] }
 0x29a   : > { %1795 = vmatprep.subr.mxu0 %v2043_v8 }
 0x29c   : > { %v614_v37 = vpop.permute.xlu1 %613  ;;  %v636_v38 = vld [vmem:[#allocation3 + $0x18] sm:$0xff] }
 0x29d   : > { %617 = vst.msk [vmem:[#allocation2 + $0x18] sm:$0xff] %vm571_vm2, %v614_v37  ;;  %1791 = vmatpush3.xpose.msk.msra.mxu1 %vm571_vm2, %v636_v38 }
 0x29e   : > { %1800 = vmatprep.subr.mxu1 %v2043_v8 }
 0x2a0   : > { %v631_v39 = vld [vmem:[#allocation2 + $0x10] sm:$0xff] }
 0x2a1   : > { %1788 = vmatmul.mubr.msk.f32.vlgmr.msra.gmra.mxu0 %vm571_vm2, %v631_v39 }
 0x2a2   : > { %1797 = vmatprep.mubr.msk.f32.mxu0 %vm2044_vm1, %v2043_v8 }
 0x2a4   : > { %v632_v40 = vld [vmem:[#allocation2 + $0x18] sm:$0xff] }
 0x2a5   : > { %1793 = vmatmul.mubr.msk.f32.vlgmr.msra.gmra.mxu1 %vm571_vm2, %v632_v40 }
 0x2a6   : > { %1802 = vmatprep.mubr.msk.f32.mxu1 %vm2044_vm1, %v2043_v8 }
 0x354   : > { %v710_v41 = vpop.f32.mrf.mxu1 }
 0x355   : > { %v942_v42 = vsel %vm571_vm2, %v710_v41, -inf }
 0x356   : > { %943 = vmax.xlane.f32.xlu1 %v942_v42  ;;  %v1779_v43 = vpop.f32.mrf.mxu1 }
 0x358   : > { %v786_v44 = vpop.f32.mrf.mxu1 }
 0x359   : > { %v945_v45 = vsel %vm571_vm2, %v786_v44, -inf }
 0x35a   : > { %946 = vmax.xlane.f32.xlu0 %v945_v45  ;;  %v1784_v46 = vpop.f32.mrf.mxu1 }
 0x361   : > { %v862_v47 = vpop.f32.mrf.mxu0 }
 0x362   : > { %v948_v48 = vsel %vm571_vm2, %v862_v47, -inf }
 0x363   : > { %v1789_v49 = vpop.f32.mrf.mxu0  ;;  %949 = vmax.xlane.f32.xlu1 %v948_v48 }
 0x364   : > { %v1705_v49 = vld [vmem:[%s2465_s6] ss:$0 sm:$0xff] }
 0x365   : > { %v938_v50 = vpop.f32.mrf.mxu1 }
 0x366   : > { %v951_v51 = vsel %vm571_vm2, %v938_v50, -inf }
 0x367   : > { %952 = vmax.xlane.f32.xlu0 %v951_v51  ;;  %v1794_v52 = vpop.f32.mrf.mxu1 }
 0x374   : > { %578 = vrot.lane.b32.xlu1 %v2230_v23, %s2052_s17  ;;  %s2058_s17 = smov 24  }
 0x3df   : > { %v944_v53 = vpop.xlane.xlu1 %943 }
 0x3e0   : > { %v954_v54 = vsub.f32 %v710_v41, %v944_v53 }
 0x3e2   : > { %v958_v55 = vmul.f32 1.442695, %v954_v54 }
 0x3e3   : > { %v947_v56 = vpop.xlane.xlu0 %946 }
 0x3e4   : > { %1945 = vpow2.f32 %v958_v55  ;;  %v955_v57 = vsub.f32 %v786_v44, %v947_v56 }
 0x3e6   : > { %v960_v58 = vmul.f32 1.442695, %v955_v57 }
 0x3e8   : > { %1947 = vpow2.f32 %v960_v58 }
 0x3ec   : > { %v950_v59 = vpop.xlane.xlu1 %949 }
 0x3ed   : > { %v956_v60 = vsub.f32 %v862_v47, %v950_v59 }
 0x3ef   : > { %v962_v61 = vmul.f32 1.442695, %v956_v60  ;;  %v1418_v60 = vld [vmem:[%s2468_s9 + $0x18] sm:$0xff] }
 0x3f0   : > { %v579_v62 = vpop.permute.xlu1 %578  ;;  %v953_v63 = vpop.xlane.xlu0 %952 }
 0x3f1   : > { %v1946_v1 = vpop.eup %1945  ;;  %1949 = vpow2.f32 %v962_v61  ;;  %581 = vst.msk [vmem:[#allocation4] sm:$0xff] %vm571_vm2, %v579_v62  ;;  %v957_v2 = vsub.f32 %v938_v50, %v953_v63  ;;  %v1416_v61 = vld [vmem:[%s2468_s9 + $0x8] sm:$0xff]  ;;  %v1415_v62 = vld [vmem:[%s2468_s9] sm:$0xff]  ;;  %v1519_v63 = vld [vmem:[%s2470_s11 + $0x78] sm:$0xff] }
 0x3f2   : > { %v966_v3 = vsel %vm571_vm2, %v1946_v1, 0.0 }
 0x3f3   : > { %v964_v4 = vmul.f32 1.442695, %v957_v2  ;;  %967 = vadd.xlane.f32.xlu1 %v966_v3  ;;  %v1517_v2 = vld [vmem:[%s2470_s11 + $0x68] sm:$0xff]  ;;  %v1516_v3 = vld [vmem:[%s2470_s11 + $0x60] sm:$0xff] }
 0x3f5   : > { %v1948_v5 = vpop.eup %1947  ;;  %1951 = vpow2.f32 %v964_v4 }
 0x3f6   : > { %v969_v6 = vsel %vm571_vm2, %v1948_v5, 0.0 }
 0x3f7   : > { %970 = vadd.xlane.f32.xlu0 %v969_v6 }
 0x3f8   : > { %v986_v7 = vld [vmem:[#allocation4] sm:$0xff] }
 0x3f9   : > { %1796 = vmatpush3.msra.mxu0 %v986_v7 }
 0x3fa   : > { %1805 = vmatprep.subr.mxu0 %v2043_v8 }
 0x3fe   : > { %v1950_v9 = vpop.eup %1949 }
 0x3ff   : > { %v972_v10 = vsel %vm571_vm2, %v1950_v9, 0.0 }
 0x400   : > { %973 = vadd.xlane.f32.xlu1 %v972_v10 }
 0x402   : > { %v1952_v11 = vpop.eup %1951 }
 0x403   : > { %v975_v12 = vsel %vm571_vm2, %v1952_v11, 0.0 }
 0x404   : > { %976 = vadd.xlane.f32.xlu0 %v975_v12 }
 0x411   : > { %608 = vrot.lane.b32.xlu1 %v2230_v23, %s2053_s19 }
 0x415   : > { %623 = vrot.lane.b32.xlu1 %v2230_v23, %s2054_s22  ;;  %s1687_s22 = sshll.u32 %s443_s0, 3 }
 0x41a   : > { %593 = vrot.lane.b32.xlu0 %v2230_v23, %s2055_s23 }
 0x47c   : > { %v968_v13 = vpop.xlane.xlu1 %967 }
 0x47d   : > { %1953 = vrcp.f32 %v968_v13 }
 0x480   : > { %v971_v14 = vpop.xlane.xlu0 %970 }
 0x481   : > { %1955 = vrcp.f32 %v971_v14  ;;  %v1515_v14 = vld [vmem:[%s2470_s11 + $0x58] sm:$0xff] }
 0x489   : > { %v974_v15 = vpop.xlane.xlu1 %973 }
 0x48a   : > { %v1954_v16 = vpop.eup %1953  ;;  %1957 = vrcp.f32 %v974_v15  ;;  %v1514_v15 = vld [vmem:[%s2470_s11 + $0x50] sm:$0xff] }
 0x48b   : > { %v982_v17 = vmul.f32 %v1954_v16, %v1946_v1  ;;  %v1518_v1 = vld [vmem:[%s2470_s11 + $0x70] sm:$0xff]  ;;  %v1513_v16 = vld [vmem:[%s2470_s11 + $0x48] sm:$0xff] }
 0x48d   : > { %1798 = vmatmul.mubr.msk.f32.vlgmr.msra.gmra.mxu0 %vm571_vm2, %v982_v17  ;;  %v609_v18 = vpop.permute.xlu1 %608  ;;  %v977_v19 = vpop.xlane.xlu0 %976  ;;  %v1512_v17 = vld [vmem:[%s2470_s11 + $0x40] sm:$0xff] }
 0x48e   : > { %612 = vst.msk [vmem:[#allocation4 + $0x10] sm:$0xff] %vm571_vm2, %v609_v18  ;;  %1959 = vrcp.f32 %v977_v19  ;;  %1807 = vmatprep.mubr.msk.f32.mxu0 %vm2044_vm1, %v2043_v8  ;;  %v1956_v23 = vpop.eup %1955  ;;  %v1511_v18 = vld [vmem:[%s2470_s11 + $0x38] sm:$0xff]  ;;  %v1510_v19 = vld [vmem:[%s2470_s11 + $0x30] sm:$0xff] }
 0x48f   : > { %v983_v27 = vmul.f32 %v1956_v23, %v1948_v5  ;;  %v1506_v23 = vld [vmem:[%s2470_s11 + $0x10] sm:$0xff] }
 0x491   : > { %v624_v20 = vpop.permute.xlu1 %623  ;;  %v594_v21 = vpop.permute.xlu0 %593 }
 0x492   : > { %627 = vst.msk [vmem:[#allocation4 + $0x18] sm:$0xff] %vm571_vm2, %v624_v20  ;;  %597 = vst.msk [vmem:[#allocation4 + $0x8] sm:$0xff] %vm571_vm2, %v594_v21  ;;  %v1509_v20 = vld [vmem:[%s2470_s11 + $0x28] sm:$0xff]  ;;  %v1508_v21 = vld [vmem:[%s2470_s11 + $0x20] sm:$0xff] }
 0x495   : > { %v988_v22 = vld [vmem:[#allocation4 + $0x10] sm:$0xff] }
 0x496   : > { %1806 = vmatpush3.msra.mxu0 %v988_v22  ;;  %v1507_v22 = vld [vmem:[%s2470_s11 + $0x18] sm:$0xff] }
 0x497   : > { %v1958_v24 = vpop.eup %1957  ;;  %1837 = vmatprep.subr.mxu0 %v2043_v8 }
 0x498   : > { %v984_v25 = vmul.f32 %v1958_v24, %v1950_v9  ;;  %v1707_v9 = vld [vmem:[%s2466_s7] ss:$0 sm:$0xff]  ;;  %v1505_v24 = vld [vmem:[%s2470_s11 + $0x8] sm:$0xff] }
 0x499   : > { %v987_v26 = vld [vmem:[#allocation4 + $0x8] sm:$0xff]  ;;  %v989_v29 = vld [vmem:[#allocation4 + $0x18] sm:$0xff] }
 0x49a   : > { %1801 = vmatpush3.msra.mxu1 %v987_v26  ;;  %1808 = vmatmul.mubr.msk.f32.vlgmr.msra.gmra.mxu0 %vm571_vm2, %v984_v25  ;;  %v1504_v25 = vld [vmem:[%s2470_s11] sm:$0xff] }
 0x49b   : > { %v1960_v28 = vpop.eup %1959  ;;  %1803 = vmatmul.mubr.msk.f32.vlgmr.msra.gmra.mxu1 %vm571_vm2, %v983_v27  ;;  %1810 = vmatprep.subr.mxu1 %v2043_v8  ;;  %v1709_v26 = vld [vmem:[%s2469_s10] ss:$0 sm:$0xff] }
 0x49c   : > { %1811 = vmatpush3.msra.mxu1 %v989_v29  ;;  %1812 = vmatprep.mubr.msk.f32.mxu1 %vm2044_vm1, %v2043_v8  ;;  %v985_v30 = vmul.f32 %v1960_v28, %v1952_v11  ;;  %v1708_v11 = vld [vmem:[%s2467_s8] ss:$0 sm:$0xff] }
 0x49d   : > { %1815 = vmatprep.subr.mxu1 %v2043_v8  ;;  %1869 = vmatprep.mubr.msk.f32.mxu0 %vm2044_vm1, %v2043_v8 }
 0x49e   : > { %1838 = vmatpush3.msra.mxu0 %v1519_v63 }
 0x49f   : > { %1813 = vmatmul.mubr.msk.f32.vlgmr.msra.gmra.mxu1 %vm571_vm2, %v985_v30  ;;  %1839 = vmatprep.subr.mxu0 %v2043_v8 }
 0x4a0   : > { %1823 = vmatprep.mubr.msk.f32.mxu1 %vm2044_vm1, %v2043_v8  ;;  %1816 = vmatpush3.msra.mxu1 %v1302_v31 }
 0x4a1   : > { %1817 = vmatprep.subr.mxu1 %v2043_v8  ;;  %1840 = vmatpush3.msra.mxu0 %v1518_v1 }
 0x4a2   : > { %1818 = vmatpush3.msra.mxu1 %v1301_v33  ;;  %1841 = vmatprep.subr.mxu0 %v2043_v8 }
 0x4a3   : > { %1819 = vmatprep.subr.mxu1 %v2043_v8  ;;  %1842 = vmatpush3.msra.mxu0 %v1517_v2 }
 0x4a4   : > { %1820 = vmatpush3.msra.mxu1 %v1300_v35  ;;  %1843 = vmatprep.subr.mxu0 %v2043_v8 }
 0x4a5   : > { %1821 = vmatprep.subr.mxu1 %v2043_v8  ;;  %1844 = vmatpush3.msra.mxu0 %v1516_v3 }
 0x4a6   : > { %1822 = vmatpush3.msra.mxu1 %v1299_v36  ;;  %1845 = vmatprep.subr.mxu0 %v2043_v8 }
 0x4a7   : > { %1826 = vmatprep.subr.mxu1 %v2043_v8  ;;  %1846 = vmatpush3.msra.mxu0 %v1515_v14 }
 0x4a8   : > { %1847 = vmatprep.subr.mxu0 %v2043_v8 }
 0x4a9   : > { %1848 = vmatpush3.msra.mxu0 %v1514_v15 }
 0x4aa   : > { %1849 = vmatprep.subr.mxu0 %v2043_v8 }
 0x4ab   : > { %1850 = vmatpush3.msra.mxu0 %v1513_v16 }
 0x4ac   : > { %1851 = vmatprep.subr.mxu0 %v2043_v8 }
 0x4ad   : > { %1852 = vmatpush3.msra.mxu0 %v1512_v17 }
 0x4ae   : > { %1853 = vmatprep.subr.mxu0 %v2043_v8 }
 0x4af   : > { %1854 = vmatpush3.msra.mxu0 %v1511_v18 }
 0x4b0   : > { %1855 = vmatprep.subr.mxu0 %v2043_v8 }
 0x4b1   : > { %1856 = vmatpush3.msra.mxu0 %v1510_v19 }
 0x4b2   : > { %1857 = vmatprep.subr.mxu0 %v2043_v8 }
 0x4b3   : > { %1858 = vmatpush3.msra.mxu0 %v1509_v20 }
 0x4b4   : > { %1859 = vmatprep.subr.mxu0 %v2043_v8 }
 0x4b5   : > { %1860 = vmatpush3.msra.mxu0 %v1508_v21 }
 0x4b6   : > { %1861 = vmatprep.subr.mxu0 %v2043_v8 }
 0x4b7   : > { %1862 = vmatpush3.msra.mxu0 %v1507_v22 }
 0x4b8   : > { %1863 = vmatprep.subr.mxu0 %v2043_v8 }
 0x4b9   : > { %1864 = vmatpush3.msra.mxu0 %v1506_v23 }
 0x4ba   : > { %1865 = vmatprep.subr.mxu0 %v2043_v8 }
 0x4bb   : > { %1866 = vmatpush3.msra.mxu0 %v1505_v24 }
 0x4bc   : > { %1867 = vmatprep.subr.mxu0 %v2043_v8 }
 0x4bd   : > { %1868 = vmatpush3.msra.mxu0 %v1504_v25 }
 0x54d   : > { %v1059_v32 = vpop.f32.mrf.mxu0 }
 0x54f   : > { %v1799_v34 = vpop.f32.mrf.mxu0 }
 0x55a   : > { %v1205_v37 = vpop.f32.mrf.mxu0 }
 0x55b   : > { %1287 = vrot.lane.b32.xlu1 %v1205_v37, %s2056_s14  ;;  %v1132_v38 = vpop.f32.mrf.mxu1  ;;  %s1713_s14 = sshll.u32 %s2033_s28, 7  ;;  %s2059_s28 = smov [#allocation5]  }
 0x55c   : > { %v1809_v39 = vpop.f32.mrf.mxu0  ;;  %1283 = vrot.lane.b32.xlu0 %v1132_v38, %s2057_s15  ;;  %s445_s15 = scalar_lea.vmem [#allocation5], %s1687_s22  ;;  %s1612_s2 = scalar_lea.hbm %s2472_s13, %s1713_s14 }
 0x55d   : > { %v1804_v40 = vpop.f32.mrf.mxu1  ;;  %s1969_s22 = sshll.u32 %s2059_s28, 4  ;;  %s1970_s22 = int_to_ptr.vmem [resolvable:$false] %s1969_s22 }
 0x55e   : > { %s1971_s23 = scalar_lea.vmem %s1970_s22, 256 }
 0x55f   : > { %v1278_v41 = vpop.f32.mrf.mxu1 }
 0x560   : > { %1291 = vrot.lane.b32.xlu0 %v1278_v41, %s2058_s17  ;;  %s1614_s17 = sshll.u32 %s445_s15, 4  ;;  %s1615_s17 = int_to_ptr.vmem [resolvable:$true] %s1614_s17 }
 0x561   : > { %v1814_v42 = vpop.f32.mrf.mxu1  ;;  %s1965_s4 = scalar_lea.vmem %s1615_s17, 128  ;;  %p1972_p1 = scmp.lt.s32.totalorder %s1615_s17, %s1970_s22 }
 0x562   : > { %p1966_p12 = scmp.ne.s32.totalorder %s1615_s17, %s1965_s4  ;;  %p1973_p2 = scmp.lt.s32.totalorder %s1971_s23, %s1965_s4 }
 0x564   : > { %p1967_p13 = pnand %p1966_p12, %p2170_p4  ;;  %p1974_p3 = por %p1973_p2, %p1972_p1 }
 0x566   : > { %p1968_p0 = pneg %p1967_p13 }
 0x568   : > { %p1975_p5 = pnand %p1974_p3, %p1968_p0 }
 0x5cd   : > { %v1288_v45 = vpop.permute.xlu1 %1287 }
 0x5ce   : > { %v1284_v43 = vpop.permute.xlu0 %1283 }
 0x5cf   : > { %v1294_v44 = vsel %vm571_vm2, %v1059_v32, %v1284_v43 }
 0x5d0   : > { %v1296_v46 = vsel %vm1295_vm3, %v1294_v44, %v1288_v45 }
 0x5d2   : > { %v1292_v47 = vpop.permute.xlu0 %1291 }
 0x5d3   : > { %v1298_v48 = vsel %vm1297_vm4, %v1296_v46, %v1292_v47 }
 0x5d4   : > { %1824 = vmatmul.mubr.msk.f32.vlgmr.msra.gmra.mxu1 %vm457_vm0, %v1298_v48 }
 0x5d5   : > { %1834 = vmatprep.mubr.msk.f32.mxu1 %vm2044_vm1, %v2043_v8  ;;  %1827 = vmatpush3.msra.mxu1 %v1418_v60 }
 0x5d6   : > { %1828 = vmatprep.subr.mxu1 %v2043_v8 }
 0x694   : > { %v1380_v50 = vpop.f32.mrf.mxu1 }
 0x695   : > { %v1381_v51 = vadd.f32 %v1705_v49, %v1380_v50 }
 0x696   : > { %v1825_v52 = vpop.f32.mrf.mxu1 }
 0x697   : > { %v2321_v53 = vadd.f32 %v1381_v51, %v2190_v0  ;;  %v1417_v0 = vld [vmem:[%s2468_s9 + $0x10] sm:$0xff] }
 0x698   : > { %1829 = vmatpush3.msra.mxu1 %v1417_v0 }
 0x699   : > { %v1387_v54 = vsel %vm457_vm0, %v2321_v53, 0.0  ;;  %1830 = vmatprep.subr.mxu1 %v2043_v8 }
 0x69a   : > { %1388 = vadd.xlane.f32.xlu1 %v1387_v54  ;;  %1831 = vmatpush3.msra.mxu1 %v1416_v61 }
 0x69b   : > { %1832 = vmatprep.subr.mxu1 %v2043_v8  ;;  %v1711_v8 = vld [vmem:[%s2471_s12] ss:$0 sm:$0xff] }
 0x69c   : > { %1833 = vmatpush3.msra.mxu1 %v1415_v62 }
 0x723   : > { %v1389_v55 = vpop.xlane.xlu1 %1388 }
 0x724   : > { %v1391_v56 = vmul.f32 0.03125, %v1389_v55 }
 0x726   : > { %v1392_v57 = vsub.f32 %v2321_v53, %v1391_v56 }
 0x728   : > { %v1393_v58 = vmul.f32 %v1392_v57, %v1392_v57 }
 0x72a   : > { %v1394_v59 = vsel %vm457_vm0, %v1393_v58, 0.0 }
 0x72b   : > { %1395 = vadd.xlane.f32.xlu0 %v1394_v59 }
 0x7b4   : > { %v1396_v4 = vpop.xlane.xlu0 %1395 }
 0x7b5   : > { %v1397_v5 = vmul.f32 0.03125, %v1396_v4 }
 0x7b7   : > { %v1398_v6 = vadd.f32 1e-05, %v1397_v5 }
 0x7b9   : > { %1961 = vrsqrt.f32 %v1398_v6 }
 0x7c6   : > { %v1962_v7 = vpop.eup %1961 }
 0x7c7   : > { %v1400_v10 = vmul.f32 %v1962_v7, %v1392_v57 }
 0x7c9   : > { %v1407_v12 = vmul.f32 %v1707_v9, %v1400_v10 }
 0x7cb   : > { %v1414_v13 = vadd.f32 %v1708_v11, %v1407_v12 }
 0x7cd   : > { %1835 = vmatmul.mubr.msk.f32.vlgmr.msra.gmra.mxu1 %vm457_vm0, %v1414_v13 }
 0x88d   : > { %v1495_v27 = vpop.f32.mrf.mxu1 }
 0x88e   : > { %v1496_v28 = vadd.f32 %v1709_v26, %v1495_v27 }
 0x88f   : > { %v1836_v29 = vpop.f32.mrf.mxu1 }
 0x890   : > { %v1500_v30 = vmul.f32 0.70710677, %v1496_v28  ;;  %v1499_v32 = vmul.f32 0.5, %v1496_v28 }
 0x892   : > { %1963 = verf.f32 %v1500_v30 }
 0x89f   : > { %v1964_v31 = vpop.eup %1963 }
 0x8a0   : > { %v1502_v33 = vadd.f32 1.0, %v1964_v31 }
 0x8a2   : > { %v1503_v34 = vmul.f32 %v1502_v33, %v1499_v32 }
 0x8a4   : > { %1870 = vmatmul.mubr.f32.vlgmr.msra.gmra.mxu0 %v1503_v34 }
 0x964   : > { %v1593_v35 = vpop.f32.mrf.mxu0 }
 0x965   : > { %v1594_v36 = vadd.f32 %v1711_v8, %v1593_v35 }
 0x966   : > { %v1871_v37 = vpop.f32.mrf.mxu0 }
 0x967   : > { %v1597_v38 = vadd.f32 %v1594_v36, %v2321_v53 }
 0x969   : > { %1598 = vst.msk [vmem:[%s445_s15] sm:$0xff] %vm457_vm0, %v1597_v38 }
 0x96a   : > { %1978 = shalt.err (!%p1975_p5)
}
 0x96b   : > { %s1979_s1 = scalar_lea.hbm %s1612_s2, 128  ;;  %s1983_s14 = scalar_lea.hbm %s2472_s13, 256 }
 0x96c   : > { %p1980_p6 = scmp.ne.s32.totalorder %s1612_s2, %s1979_s1  ;;  %p1984_p10 = scmp.lt.s32.totalorder %s1612_s2, %s2472_s13 }
 0x96d   : > { %p1985_p11 = scmp.lt.s32.totalorder %s1983_s14, %s1979_s1 }
 0x96e   : > { %p1981_p7 = pnand %p1980_p6, %p2170_p4 }
 0x96f   : > { %p1986_p12 = por %p1985_p11, %p1984_p10 }
 0x970   : > { %p1982_p9 = pneg %p1981_p7 }
 0x972   : > { %p1987_p13 = pnand %p1986_p12, %p1982_p9 }
 0x974   : > { %1990 = shalt.err (!%p1987_p13)
}
 0x975   : > { %1872 = dma.vmem_to_hbm [thread:$0]  (%p2170_p4), %s1615_s17, 128, %s1612_s2, %s1600_s3  }
 0x976 PF: > { %p1878_p0 = scmp.ge.s32.totalorder %s2041_s30, 2  ;;  %s1626_s4 = sand.u32 1, %s2021_s25  }
 0x977   : > { %s1627_s28 = scalar_lea.sflag [#allocation6], %s1626_s4 }
 0x978   : > { %p1875_p1 = pnand %p1878_p0, %p2177_p8 }
 0x97a   : > { %p1876_p2 = pneg %p1875_p1 }
 0x97c   : > { %2016 = dma.done.wait (%p1876_p2), %s1627_s28, 128  }
 0x97d   : > { %2018 = vsyncadd (%p1876_p2), %s1627_s28, 4294967168  ;;  %s26_s30 = sadd.s32 1, %s2041_s30   ;;  %s2485_s25 = smov %s2025_s26 }
 0x97e   : > { %p23_p3 = scmp.ge.s32.totalorder %s26_s30, 4   ;;  %s2486_s26 = smov %s2029_s27 }
 0x97f   : > { %s2487_s27 = smov %s2183_s21  ;;  %s2488_s28 = smov %s2037_s29 }
 0x980   : > { %s2489_s29 = smov %s2491_s16  ;;  %25 = sbr.rel (!%p23_p3) target bundleno = 10 (0xa), region = 120 }
 0x985   :  { %1632 = vsyncpa [#allocation6], 1 }
 0x986   :  { %1634 = vsyncpa [#allocation6 + $0x1], 1 }

</bundles_post_ra>
